<compile_context>
chip_gen: v7x
topology: tpu7x:2x2x1
jax: 0.10.0
libtpu: 0.0.40
codegen_flags: <defaults>
</compile_context>

<pallas_src>
import math

import jax
import jax.numpy as jnp
from jax.experimental import pallas as pl
from jax.experimental.pallas import tpu as pltpu


def channel_attention_kernel(x_ref, wq_ref, wk_ref, wv_ref, wp_ref, bp_ref,
                             temp_ref, hrow_ref, hcol_ref, o_ref, attn_ref):
    bblk, n_tok, c = x_ref.shape
    rows = bblk * n_tok

    # Flatten the batch block so the projection matmuls get tall LHS tiles
    # (free relayout when n_tok is a multiple of 8).
    x = x_ref[...].reshape(rows, c).astype(jnp.bfloat16)

    # q/k/v projections (qkv_bias=False).  bf16 MXU operands, f32 accumulate.
    q = jnp.dot(x, wq_ref[...], preferred_element_type=jnp.float32)   # [rows, c]
    k = jnp.dot(x, wk_ref[...], preferred_element_type=jnp.float32)
    v = jnp.dot(x, wv_ref[...], preferred_element_type=jnp.float32)

    temp = temp_ref[...]            # [1, c] per-channel (repeated per-head) temp

    # Same-head multiplicative mask, built in-kernel from two tiny per-channel
    # head-id vectors (replaces the former [C, C] additive-bias HBM input).
    mask = (hcol_ref[...] == hrow_ref[...]).astype(jnp.float32)       # [c, c]

    for b in range(bblk):   # static loop; every iteration ends in a scratch store
        s = b * n_tok
        qb = q[s:s + n_tok, :]                                        # [N, c]
        kb = k[s:s + n_tok, :]
        vb = v[s:s + n_tok, :]

        # F.normalize(dim=-1) on the transposed [d, N] per-head views ==
        # per-channel L2 normalize over tokens.
        # 1/max(||.||, 1e-12) == rsqrt(max(ss, 1e-24)).
        q_ss = jnp.sum(qb * qb, axis=0, keepdims=True)                # [1, c]
        k_ss = jnp.sum(kb * kb, axis=0, keepdims=True)
        qn = (qb * jax.lax.rsqrt(jnp.maximum(q_ss, 1e-24))).astype(jnp.bfloat16)
        # Per-head temperature folded into the K normalization row (scales Gram
        # columns; exact on the same-head blocks that survive the mask).
        kn = (kb * (jax.lax.rsqrt(jnp.maximum(k_ss, 1e-24)) * temp)
              ).astype(jnp.bfloat16)

        # Channel Gram over tokens -> [c, c] logits (bf16 in, f32 acc).
        g = jax.lax.dot_general(qn, kn, (((0,), (0,)), ((), ())),
                                preferred_element_type=jnp.float32)
        g = g - jnp.max(g, axis=-1, keepdims=True)     # shift-invariant softmax
        p = jnp.exp(g) * mask                          # kill other-head blocks
        p = p * pl.reciprocal(jnp.sum(p, axis=-1, keepdims=True), approx=True)
        # attn_drop(p=0) is identity.

        # out[n, i] = sum_j p[i, j] * v[n, j]  (contract last dims of both).
        ob = jax.lax.dot_general(vb.astype(jnp.bfloat16), p.astype(jnp.bfloat16),
                                 (((1,), (1,)), ((), ())),
                                 preferred_element_type=jnp.float32)  # [N, c]
        attn_ref[s:s + n_tok, :] = ob.astype(jnp.bfloat16)

    # Output projection (with bias) on the whole slab; proj_drop(p=0) is identity.
    y = jnp.dot(attn_ref[...], wp_ref[...], preferred_element_type=jnp.float32)
    y = y + bp_ref[...]                                               # [1, c]
    o_ref[...] = y.reshape(bblk, n_tok, c).astype(o_ref.dtype)


def _vmem_limit_bytes():
    """Generation-aware scoped-VMEM request: ~48 MiB on 64 MiB parts (v7x),
    ~96-100 MiB on 128 MiB parts (v5e/v6e)."""
    cap = 64 * 1024 * 1024                    # conservative default (v7x per-TC)
    try:
        cap = int(pltpu.get_tpu_info().vmem_capacity_bytes)
    except Exception:                         # older jax / query unavailable
        pass
    return int(min(cap * 3 // 4, 100 * 1024 * 1024))


def _choose_batch_block(batch, n_tok, c_pad, *, budget_bytes, target_rows=512):
    """Largest divisor of `batch` (capped at batch//2 so the grid has >= 2 steps
    for v7x's two TensorCores and for pipeline overlap) whose per-step VMEM
    footprint fits the byte budget; stops growing once batch_block*N reaches
    target_rows (enough rows to fill the 256x256 / 4x128x128 MXU)."""
    max_bb = max(1, batch // 2)
    best = 1
    for bb in range(1, max_bb + 1):
        if batch % bb:
            continue
        rows = bb * n_tok
        # 16 B/elem: double-buffered f32 x & out tiles.
        # ~24 B/elem: bf16 x copy, f32 q/k/v, bf16 attn scratch, f32 y.
        # + per-batch-element [C, C] gram / softmax / mask temporaries.
        step_bytes = rows * c_pad * (16 + 24) + c_pad * c_pad * 40
        if step_bytes > budget_bytes:
            break
        best = bb
        if rows >= target_rows:
            break
    return best


def channel_attention(x, temperature, wqkv, wproj, bproj, *, num_heads,
                      batch_block=None):
    B, N, C = x.shape
    assert C % num_heads == 0
    d = C // num_heads

    # Lane-dense channel presentation: pad C up to 128 for small channel counts
    # so kernel loads/stores use full 128-lane vst (not masked vst.msk).
    Cp = 128 if C < 128 else C
    pad = Cp - C

    # Split the fused qkv weight (PyTorch [3C, C]) into three [C, C] operands,
    # pre-transposed for x @ W, cast to bf16 for the MXU.
    wq = wqkv[0 * C:1 * C, :].T.astype(jnp.bfloat16)
    wk = wqkv[1 * C:2 * C, :].T.astype(jnp.bfloat16)
    wv = wqkv[2 * C:3 * C, :].T.astype(jnp.bfloat16)
    wp = wproj.T.astype(jnp.bfloat16)
    bp = bproj.reshape(1, C).astype(jnp.float32)

    # Per-channel temperature row [1, C] (head value repeated d times).
    temp_c = jnp.repeat(temperature.reshape(num_heads).astype(jnp.float32),
                        d).reshape(1, C)

    if pad:
        # Padded channels are exact zeros through the whole kernel (zero weight
        # rows/cols, padded head ids >= num_heads) and are sliced off below.
        x = jnp.pad(x, ((0, 0), (0, 0), (0, pad)))
        wq = jnp.pad(wq, ((0, pad), (0, pad)))
        wk = jnp.pad(wk, ((0, pad), (0, pad)))
        wv = jnp.pad(wv, ((0, pad), (0, pad)))
        wp = jnp.pad(wp, ((0, pad), (0, pad)))
        bp = jnp.pad(bp, ((0, 0), (0, pad)))
        temp_c = jnp.pad(temp_c, ((0, 0), (0, pad)), constant_values=1.0)

    # Per-channel head ids for the in-kernel same-head mask (row + column forms).
    head_ids = (jnp.arange(Cp, dtype=jnp.int32) // d).astype(jnp.float32)
    hrow = head_ids.reshape(1, Cp)
    hcol = head_ids.reshape(Cp, 1)

    vmem_limit = _vmem_limit_bytes()
    if batch_block is None:
        weight_bytes = 2 * (4 * Cp * Cp * 2 + 4 * Cp * 4)  # worst case 2 buffers
        budget = vmem_limit - weight_bytes - (4 << 20)
        batch_block = _choose_batch_block(B, N, Cp, budget_bytes=budget)
    assert B % batch_block == 0
    grid = (B // batch_block,)

    def _call(const_spec_kwargs):
        def w_spec(shape):
            return pl.BlockSpec(shape, lambda i: (0, 0), **const_spec_kwargs)

        return pl.pallas_call(
            channel_attention_kernel,
            out_shape=jax.ShapeDtypeStruct((B, N, Cp), x.dtype),
            grid_spec=pltpu.PrefetchScalarGridSpec(
                num_scalar_prefetch=0,
                grid=grid,
                in_specs=[
                    pl.BlockSpec((batch_block, N, Cp), lambda i: (i, 0, 0)),  # x
                    w_spec((Cp, Cp)),     # Wq^T (bf16)
                    w_spec((Cp, Cp)),     # Wk^T (bf16)
                    w_spec((Cp, Cp)),     # Wv^T (bf16)
                    w_spec((Cp, Cp)),     # Wproj^T (bf16)
                    w_spec((1, Cp)),      # proj bias (f32)
                    w_spec((1, Cp)),      # per-channel temperature (f32)
                    w_spec((1, Cp)),      # head ids, row form
                    w_spec((Cp, 1)),      # head ids, column form
                ],
                out_specs=pl.BlockSpec((batch_block, N, Cp), lambda i: (i, 0, 0)),
                scratch_shapes=[pltpu.VMEM((batch_block * N, Cp), jnp.bfloat16)]),
            compiler_params=pltpu.CompilerParams(
                dimension_semantics=("parallel",),   # shard batch over v7x's 2 TCs
                vmem_limit_bytes=vmem_limit),
        )(x, wq, wk, wv, wp, bp, temp_c, hrow, hcol)

    try:
        # Grid-invariant operands fetched once -> single buffer saves VMEM.
        out = _call({"pipeline_mode": pl.Buffered(1)})
    except Exception:   # jax build without 1-deep Buffered specs: default 2-deep
        out = _call({})
    return out[:, :, :C] if pad else out


def channel_attention_ref(x, temperature, wqkv, wproj, bproj, *, num_heads):
    """Pure-JAX f32 reference mirroring the PyTorch forward."""
    B, N, C = x.shape
    d = C // num_heads
    qkv = x @ wqkv.T                                            # [B, N, 3C]
    qkv = qkv.reshape(B, N, 3, num_heads, d).transpose(2, 0, 3, 1, 4)
    q, k, v = qkv[0], qkv[1], qkv[2]                            # [B, H, N, d]
    q = jnp.swapaxes(q, -2, -1)                                 # [B, H, d, N]
    k = jnp.swapaxes(k, -2, -1)
    v = jnp.swapaxes(v, -2, -1)
    q = q / jnp.maximum(jnp.linalg.norm(q, axis=-1, keepdims=True), 1e-12)
    k = k / jnp.maximum(jnp.linalg.norm(k, axis=-1, keepdims=True), 1e-12)
    attn = (q @ jnp.swapaxes(k, -2, -1)) * temperature[None]    # [B, H, d, d]
    attn = jax.nn.softmax(attn, axis=-1)
    out = (attn @ v).transpose(0, 3, 1, 2).reshape(B, N, C)
    return out @ wproj.T + bproj


if __name__ == "__main__":
    B, N, C, H = 2, 16, 32, 8
    key = jax.random.PRNGKey(0)
    kx, kqkv, kw, kb, kt = jax.random.split(key, 5)

    x = jax.random.normal(kx, (B, N, C), dtype=jnp.float32)

    # Deterministic synthetic parameters (PyTorch Linear shape convention [out, in]).
    bound = 1.0 / math.sqrt(C)
    wqkv = jax.random.uniform(kqkv, (3 * C, C), jnp.float32, -bound, bound)
    wproj = jax.random.uniform(kw, (C, C), jnp.float32, -bound, bound)
    bproj = jax.random.uniform(kb, (C,), jnp.float32, -bound, bound)
    temperature = jax.random.uniform(kt, (H, 1, 1), jnp.float32, 0.5, 1.5)

    out = channel_attention(x, temperature, wqkv, wproj, bproj, num_heads=H)
    out = jax.block_until_ready(out)

    ref = channel_attention_ref(x, temperature, wqkv, wproj, bproj, num_heads=H)
    assert out.shape == (B, N, C)
    # bf16 MXU operands on every matmul + approx reciprocal => ~1e-2 drift vs f32.
    assert jnp.allclose(out, ref, atol=4e-2, rtol=4e-2), "mismatch vs reference"

    print("KERNEL_OK")
</pallas_src>

<mosaic_0001>
module attributes {stable_mosaic.version = 11 : i64} {
  func.func @channel_attention_kernel(%arg0: i32, %arg1: memref<1x16x128xf32, #tpu.memory_space<vmem>>, %arg2: memref<128x128xbf16, #tpu.memory_space<vmem>>, %arg3: memref<128x128xbf16, #tpu.memory_space<vmem>>, %arg4: memref<128x128xbf16, #tpu.memory_space<vmem>>, %arg5: memref<128x128xbf16, #tpu.memory_space<vmem>>, %arg6: memref<1x128xf32, #tpu.memory_space<vmem>>, %arg7: memref<1x128xf32, #tpu.memory_space<vmem>>, %arg8: memref<1x128xf32, #tpu.memory_space<vmem>>, %arg9: memref<128x1xf32, #tpu.memory_space<vmem>>, %arg10: memref<1x16x128xf32, #tpu.memory_space<vmem>>, %arg11: memref<16x128xbf16, #tpu.memory_space<vmem>>) attributes {dimension_semantics = [#tpu.dimension_semantics<parallel>], iteration_bounds = array<i64: 2>, scalar_prefetch = 0 : i64, scratch_operands = 1 : i64, tpu.core_type = #tpu.core_type<tc>, window_params = [{transform_indices = @transform_0, window_bounds = array<i64: 1, 16, 128>}, {pipeline_mode = #tpu.pipeline_mode<synchronous>, transform_indices = @transform_1, window_bounds = array<i64: 128, 128>}, {pipeline_mode = #tpu.pipeline_mode<synchronous>, transform_indices = @transform_2, window_bounds = array<i64: 128, 128>}, {pipeline_mode = #tpu.pipeline_mode<synchronous>, transform_indices = @transform_3, window_bounds = array<i64: 128, 128>}, {pipeline_mode = #tpu.pipeline_mode<synchronous>, transform_indices = @transform_4, window_bounds = array<i64: 128, 128>}, {pipeline_mode = #tpu.pipeline_mode<synchronous>, transform_indices = @transform_5, window_bounds = array<i64: 1, 128>}, {pipeline_mode = #tpu.pipeline_mode<synchronous>, transform_indices = @transform_6, window_bounds = array<i64: 1, 128>}, {pipeline_mode = #tpu.pipeline_mode<synchronous>, transform_indices = @transform_7, window_bounds = array<i64: 1, 128>}, {pipeline_mode = #tpu.pipeline_mode<synchronous>, transform_indices = @transform_8, window_bounds = array<i64: 128, 1>}, {transform_indices = @transform_9, window_bounds = array<i64: 1, 16, 128>}]} {
    %c0 = arith.constant 0 : index
    %c0_0 = arith.constant 0 : index
    %c0_1 = arith.constant 0 : index
    %0 = vector.load %arg1[%c0, %c0_0, %c0_1] : memref<1x16x128xf32, #tpu.memory_space<vmem>>, vector<1x16x128xf32>
    %1 = vector.shape_cast %0 : vector<1x16x128xf32> to vector<16x128xf32>
    %2 = arith.truncf %1 : vector<16x128xf32> to vector<16x128xbf16>
    %c0_2 = arith.constant 0 : index
    %c0_3 = arith.constant 0 : index
    %3 = vector.load %arg2[%c0_2, %c0_3] : memref<128x128xbf16, #tpu.memory_space<vmem>>, vector<128x128xbf16>
    %cst = arith.constant dense<0.000000e+00> : vector<16x128xf32>
    %4 = tpu.matmul %2, %3, %cst {dimension_numbers = #tpu.dot_dimension_numbers<[1], [0], [0], [1], [0, 0, 1, 1], [], []>} : vector<16x128xbf16>, vector<128x128xbf16>, vector<16x128xf32> -> vector<16x128xf32>
    %c0_4 = arith.constant 0 : index
    %c0_5 = arith.constant 0 : index
    %5 = vector.load %arg3[%c0_4, %c0_5] : memref<128x128xbf16, #tpu.memory_space<vmem>>, vector<128x128xbf16>
    %cst_6 = arith.constant dense<0.000000e+00> : vector<16x128xf32>
    %6 = tpu.matmul %2, %5, %cst_6 {dimension_numbers = #tpu.dot_dimension_numbers<[1], [0], [0], [1], [0, 0, 1, 1], [], []>} : vector<16x128xbf16>, vector<128x128xbf16>, vector<16x128xf32> -> vector<16x128xf32>
    %c0_7 = arith.constant 0 : index
    %c0_8 = arith.constant 0 : index
    %7 = vector.load %arg4[%c0_7, %c0_8] : memref<128x128xbf16, #tpu.memory_space<vmem>>, vector<128x128xbf16>
    %cst_9 = arith.constant dense<0.000000e+00> : vector<16x128xf32>
    %8 = tpu.matmul %2, %7, %cst_9 {dimension_numbers = #tpu.dot_dimension_numbers<[1], [0], [0], [1], [0, 0, 1, 1], [], []>} : vector<16x128xbf16>, vector<128x128xbf16>, vector<16x128xf32> -> vector<16x128xf32>
    %c0_10 = arith.constant 0 : index
    %c0_11 = arith.constant 0 : index
    %9 = vector.load %arg7[%c0_10, %c0_11] : memref<1x128xf32, #tpu.memory_space<vmem>>, vector<1x128xf32>
    %c0_12 = arith.constant 0 : index
    %c0_13 = arith.constant 0 : index
    %10 = vector.load %arg9[%c0_12, %c0_13] : memref<128x1xf32, #tpu.memory_space<vmem>>, vector<128x1xf32>
    %c0_14 = arith.constant 0 : index
    %c0_15 = arith.constant 0 : index
    %11 = vector.load %arg8[%c0_14, %c0_15] : memref<1x128xf32, #tpu.memory_space<vmem>>, vector<1x128xf32>
    %12 = vector.broadcast %10 : vector<128x1xf32> to vector<128x128xf32>
    %13 = vector.broadcast %11 : vector<1x128xf32> to vector<128x128xf32>
    %14 = arith.cmpf oeq, %12, %13 : vector<128x128xf32>
    %15 = arith.extui %14 : vector<128x128xi1> to vector<128x128xi32>
    %16 = arith.sitofp %15 : vector<128x128xi32> to vector<128x128xf32>
    %17 = arith.mulf %4, %4 : vector<16x128xf32>
    %cst_16 = arith.constant dense<0.000000e+00> : vector<128xf32>
    %18 = vector.multi_reduction <add>, %17, %cst_16 [0] : vector<16x128xf32> to vector<128xf32>
    %19 = vector.shape_cast %18 : vector<128xf32> to vector<1x128xf32>
    %20 = arith.mulf %6, %6 : vector<16x128xf32>
    %cst_17 = arith.constant dense<0.000000e+00> : vector<128xf32>
    %21 = vector.multi_reduction <add>, %20, %cst_17 [0] : vector<16x128xf32> to vector<128xf32>
    %22 = vector.shape_cast %21 : vector<128xf32> to vector<1x128xf32>
    %cst_18 = arith.constant 1.000000e-24 : f32
    %23 = vector.broadcast %cst_18 : f32 to vector<1x128xf32>
    %24 = arith.maximumf %19, %23 : vector<1x128xf32>
    %25 = math.rsqrt %24 : vector<1x128xf32>
    %26 = vector.broadcast %25 : vector<1x128xf32> to vector<16x128xf32>
    %27 = arith.mulf %4, %26 : vector<16x128xf32>
    %28 = arith.truncf %27 : vector<16x128xf32> to vector<16x128xbf16>
    %cst_19 = arith.constant 1.000000e-24 : f32
    %29 = vector.broadcast %cst_19 : f32 to vector<1x128xf32>
    %30 = arith.maximumf %22, %29 : vector<1x128xf32>
    %31 = math.rsqrt %30 : vector<1x128xf32>
    %32 = arith.mulf %31, %9 : vector<1x128xf32>
    %33 = vector.broadcast %32 : vector<1x128xf32> to vector<16x128xf32>
    %34 = arith.mulf %6, %33 : vector<16x128xf32>
    %35 = arith.truncf %34 : vector<16x128xf32> to vector<16x128xbf16>
    %cst_20 = arith.constant dense<0.000000e+00> : vector<128x128xf32>
    %36 = tpu.matmul %28, %35, %cst_20 {dimension_numbers = #tpu.dot_dimension_numbers<[0], [0], [1], [1], [0, 1, 1, 1], [], []>} : vector<16x128xbf16>, vector<16x128xbf16>, vector<128x128xf32> -> vector<128x128xf32>
    %cst_21 = arith.constant dense<0xFF800000> : vector<128xf32>
    %37 = vector.multi_reduction <maximumf>, %36, %cst_21 [1] : vector<128x128xf32> to vector<128xf32>
    %38 = vector.shape_cast %37 : vector<128xf32> to vector<128x1xf32>
    %39 = vector.broadcast %38 : vector<128x1xf32> to vector<128x128xf32>
    %40 = arith.subf %36, %39 : vector<128x128xf32>
    %41 = math.exp %40 : vector<128x128xf32>
    %42 = arith.mulf %41, %16 : vector<128x128xf32>
    %cst_22 = arith.constant dense<0.000000e+00> : vector<128xf32>
    %43 = vector.multi_reduction <add>, %42, %cst_22 [1] : vector<128x128xf32> to vector<128xf32>
    %44 = vector.shape_cast %43 : vector<128xf32> to vector<128x1xf32>
    %45 = tpu.reciprocal %44 {approx = true} : vector<128x1xf32> -> vector<128x1xf32>
    %46 = vector.broadcast %45 : vector<128x1xf32> to vector<128x128xf32>
    %47 = arith.mulf %42, %46 : vector<128x128xf32>
    %48 = arith.truncf %8 : vector<16x128xf32> to vector<16x128xbf16>
    %49 = arith.truncf %47 : vector<128x128xf32> to vector<128x128xbf16>
    %cst_23 = arith.constant dense<0.000000e+00> : vector<16x128xf32>
    %50 = tpu.matmul %48, %49, %cst_23 {dimension_numbers = #tpu.dot_dimension_numbers<[1], [1], [0], [0], [0, 0, 1, 0], [], []>} : vector<16x128xbf16>, vector<128x128xbf16>, vector<16x128xf32> -> vector<16x128xf32>
    %51 = arith.truncf %50 : vector<16x128xf32> to vector<16x128xbf16>
    %c0_24 = arith.constant 0 : index
    %c0_25 = arith.constant 0 : index
    %52 = vector.load %arg11[%c0_24, %c0_25] : memref<16x128xbf16, #tpu.memory_space<vmem>>, vector<16x128xbf16>
    tpu.vector_store %arg11[%c0_24, %c0_25], %51 {strides = array<i32>} : memref<16x128xbf16, #tpu.memory_space<vmem>>, vector<16x128xbf16>,
    %c0_26 = arith.constant 0 : index
    %c0_27 = arith.constant 0 : index
    %53 = vector.load %arg11[%c0_26, %c0_27] : memref<16x128xbf16, #tpu.memory_space<vmem>>, vector<16x128xbf16>
    %c0_28 = arith.constant 0 : index
    %c0_29 = arith.constant 0 : index
    %54 = vector.load %arg5[%c0_28, %c0_29] : memref<128x128xbf16, #tpu.memory_space<vmem>>, vector<128x128xbf16>
    %cst_30 = arith.constant dense<0.000000e+00> : vector<16x128xf32>
    %55 = tpu.matmul %53, %54, %cst_30 {dimension_numbers = #tpu.dot_dimension_numbers<[1], [0], [0], [1], [0, 0, 1, 1], [], []>} : vector<16x128xbf16>, vector<128x128xbf16>, vector<16x128xf32> -> vector<16x128xf32>
    %c0_31 = arith.constant 0 : index
    %c0_32 = arith.constant 0 : index
    %56 = vector.load %arg6[%c0_31, %c0_32] : memref<1x128xf32, #tpu.memory_space<vmem>>, vector<1x128xf32>
    %57 = vector.broadcast %56 : vector<1x128xf32> to vector<16x128xf32>
    %58 = arith.addf %55, %57 : vector<16x128xf32>
    %59 = vector.shape_cast %58 : vector<16x128xf32> to vector<1x16x128xf32>
    %c0_33 = arith.constant 0 : index
    %c0_34 = arith.constant 0 : index
    %c0_35 = arith.constant 0 : index
    %60 = vector.load %arg10[%c0_33, %c0_34, %c0_35] : memref<1x16x128xf32, #tpu.memory_space<vmem>>, vector<1x16x128xf32>
    tpu.vector_store %arg10[%c0_33, %c0_34, %c0_35], %59 {strides = array<i32>} : memref<1x16x128xf32, #tpu.memory_space<vmem>>, vector<1x16x128xf32>,
    return
  }
  func.func @transform_0(%arg0: i32) -> (i32, i32, i32) {
    %c0_i32 = arith.constant 0 : i32
    %c0_i32_0 = arith.constant 0 : i32
    %c0_i32_1 = arith.constant 0 : i32
    return %arg0, %c0_i32, %c0_i32_0 : i32, i32, i32
  }
  func.func @transform_1(%arg0: i32) -> (i32, i32) {
    %c0_i32 = arith.constant 0 : i32
    %c0_i32_0 = arith.constant 0 : i32
    %c0_i32_1 = arith.constant 0 : i32
    return %c0_i32, %c0_i32_0 : i32, i32
  }
  func.func @transform_2(%arg0: i32) -> (i32, i32) {
    %c0_i32 = arith.constant 0 : i32
    %c0_i32_0 = arith.constant 0 : i32
    %c0_i32_1 = arith.constant 0 : i32
    return %c0_i32, %c0_i32_0 : i32, i32
  }
  func.func @transform_3(%arg0: i32) -> (i32, i32) {
    %c0_i32 = arith.constant 0 : i32
    %c0_i32_0 = arith.constant 0 : i32
    %c0_i32_1 = arith.constant 0 : i32
    return %c0_i32, %c0_i32_0 : i32, i32
  }
  func.func @transform_4(%arg0: i32) -> (i32, i32) {
    %c0_i32 = arith.constant 0 : i32
    %c0_i32_0 = arith.constant 0 : i32
    %c0_i32_1 = arith.constant 0 : i32
    return %c0_i32, %c0_i32_0 : i32, i32
  }
  func.func @transform_5(%arg0: i32) -> (i32, i32) {
    %c0_i32 = arith.constant 0 : i32
    %c0_i32_0 = arith.constant 0 : i32
    %c0_i32_1 = arith.constant 0 : i32
    return %c0_i32, %c0_i32_0 : i32, i32
  }
  func.func @transform_6(%arg0: i32) -> (i32, i32) {
    %c0_i32 = arith.constant 0 : i32
    %c0_i32_0 = arith.constant 0 : i32
    %c0_i32_1 = arith.constant 0 : i32
    return %c0_i32, %c0_i32_0 : i32, i32
  }
  func.func @transform_7(%arg0: i32) -> (i32, i32) {
    %c0_i32 = arith.constant 0 : i32
    %c0_i32_0 = arith.constant 0 : i32
    %c0_i32_1 = arith.constant 0 : i32
    return %c0_i32, %c0_i32_0 : i32, i32
  }
  func.func @transform_8(%arg0: i32) -> (i32, i32) {
    %c0_i32 = arith.constant 0 : i32
    %c0_i32_0 = arith.constant 0 : i32
    %c0_i32_1 = arith.constant 0 : i32
    return %c0_i32, %c0_i32_0 : i32, i32
  }
  func.func @transform_9(%arg0: i32) -> (i32, i32, i32) {
    %c0_i32 = arith.constant 0 : i32
    %c0_i32_0 = arith.constant 0 : i32
    %c0_i32_1 = arith.constant 0 : i32
    return %arg0, %c0_i32, %c0_i32_0 : i32, i32, i32
  }
}

module attributes {stable_mosaic.version = 11 : i64} {
  func.func @channel_attention_kernel(%arg0: i32, %arg1: memref<1x16x128xf32, #tpu.memory_space<vmem>>, %arg2: memref<128x128xbf16, #tpu.memory_space<vmem>>, %arg3: memref<128x128xbf16, #tpu.memory_space<vmem>>, %arg4: memref<128x128xbf16, #tpu.memory_space<vmem>>, %arg5: memref<128x128xbf16, #tpu.memory_space<vmem>>, %arg6: memref<1x128xf32, #tpu.memory_space<vmem>>, %arg7: memref<1x128xf32, #tpu.memory_space<vmem>>, %arg8: memref<1x128xf32, #tpu.memory_space<vmem>>, %arg9: memref<128x1xf32, #tpu.memory_space<vmem>>, %arg10: memref<1x16x128xf32, #tpu.memory_space<vmem>>, %arg11: memref<16x128xbf16, #tpu.memory_space<vmem>>) attributes {dimension_semantics = [#tpu.dimension_semantics<parallel>], iteration_bounds = array<i64: 2>, scalar_prefetch = 0 : i64, scratch_operands = 1 : i64, tpu.core_type = #tpu.core_type<tc>, window_params = [{transform_indices = @transform_0, window_bounds = array<i64: 1, 16, 128>}, {pipeline_mode = #tpu.pipeline_mode<synchronous>, transform_indices = @transform_1, window_bounds = array<i64: 128, 128>}, {pipeline_mode = #tpu.pipeline_mode<synchronous>, transform_indices = @transform_2, window_bounds = array<i64: 128, 128>}, {pipeline_mode = #tpu.pipeline_mode<synchronous>, transform_indices = @transform_3, window_bounds = array<i64: 128, 128>}, {pipeline_mode = #tpu.pipeline_mode<synchronous>, transform_indices = @transform_4, window_bounds = array<i64: 128, 128>}, {pipeline_mode = #tpu.pipeline_mode<synchronous>, transform_indices = @transform_5, window_bounds = array<i64: 1, 128>}, {pipeline_mode = #tpu.pipeline_mode<synchronous>, transform_indices = @transform_6, window_bounds = array<i64: 1, 128>}, {pipeline_mode = #tpu.pipeline_mode<synchronous>, transform_indices = @transform_7, window_bounds = array<i64: 1, 128>}, {pipeline_mode = #tpu.pipeline_mode<synchronous>, transform_indices = @transform_8, window_bounds = array<i64: 128, 1>}, {transform_indices = @transform_9, window_bounds = array<i64: 1, 16, 128>}]} {
    %c0 = arith.constant 0 : index
    %c0_0 = arith.constant 0 : index
    %c0_1 = arith.constant 0 : index
    %0 = vector.load %arg1[%c0, %c0_0, %c0_1] : memref<1x16x128xf32, #tpu.memory_space<vmem>>, vector<1x16x128xf32>
    %1 = vector.shape_cast %0 : vector<1x16x128xf32> to vector<16x128xf32>
    %2 = arith.truncf %1 : vector<16x128xf32> to vector<16x128xbf16>
    %c0_2 = arith.constant 0 : index
    %c0_3 = arith.constant 0 : index
    %3 = vector.load %arg2[%c0_2, %c0_3] : memref<128x128xbf16, #tpu.memory_space<vmem>>, vector<128x128xbf16>
    %cst = arith.constant dense<0.000000e+00> : vector<16x128xf32>
    %4 = tpu.matmul %2, %3, %cst {dimension_numbers = #tpu.dot_dimension_numbers<[1], [0], [0], [1], [0, 0, 1, 1], [], []>} : vector<16x128xbf16>, vector<128x128xbf16>, vector<16x128xf32> -> vector<16x128xf32>
    %c0_4 = arith.constant 0 : index
    %c0_5 = arith.constant 0 : index
    %5 = vector.load %arg3[%c0_4, %c0_5] : memref<128x128xbf16, #tpu.memory_space<vmem>>, vector<128x128xbf16>
    %cst_6 = arith.constant dense<0.000000e+00> : vector<16x128xf32>
    %6 = tpu.matmul %2, %5, %cst_6 {dimension_numbers = #tpu.dot_dimension_numbers<[1], [0], [0], [1], [0, 0, 1, 1], [], []>} : vector<16x128xbf16>, vector<128x128xbf16>, vector<16x128xf32> -> vector<16x128xf32>
    %c0_7 = arith.constant 0 : index
    %c0_8 = arith.constant 0 : index
    %7 = vector.load %arg4[%c0_7, %c0_8] : memref<128x128xbf16, #tpu.memory_space<vmem>>, vector<128x128xbf16>
    %cst_9 = arith.constant dense<0.000000e+00> : vector<16x128xf32>
    %8 = tpu.matmul %2, %7, %cst_9 {dimension_numbers = #tpu.dot_dimension_numbers<[1], [0], [0], [1], [0, 0, 1, 1], [], []>} : vector<16x128xbf16>, vector<128x128xbf16>, vector<16x128xf32> -> vector<16x128xf32>
    %c0_10 = arith.constant 0 : index
    %c0_11 = arith.constant 0 : index
    %9 = vector.load %arg7[%c0_10, %c0_11] : memref<1x128xf32, #tpu.memory_space<vmem>>, vector<1x128xf32>
    %c0_12 = arith.constant 0 : index
    %c0_13 = arith.constant 0 : index
    %10 = vector.load %arg9[%c0_12, %c0_13] : memref<128x1xf32, #tpu.memory_space<vmem>>, vector<128x1xf32>
    %c0_14 = arith.constant 0 : index
    %c0_15 = arith.constant 0 : index
    %11 = vector.load %arg8[%c0_14, %c0_15] : memref<1x128xf32, #tpu.memory_space<vmem>>, vector<1x128xf32>
    %12 = vector.broadcast %10 : vector<128x1xf32> to vector<128x128xf32>
    %13 = vector.broadcast %11 : vector<1x128xf32> to vector<128x128xf32>
    %14 = arith.cmpf oeq, %12, %13 : vector<128x128xf32>
    %15 = arith.extui %14 : vector<128x128xi1> to vector<128x128xi32>
    %16 = arith.sitofp %15 : vector<128x128xi32> to vector<128x128xf32>
    %17 = arith.mulf %4, %4 : vector<16x128xf32>
    %cst_16 = arith.constant dense<0.000000e+00> : vector<128xf32>
    %18 = vector.multi_reduction <add>, %17, %cst_16 [0] : vector<16x128xf32> to vector<128xf32>
    %19 = vector.shape_cast %18 : vector<128xf32> to vector<1x128xf32>
    %20 = arith.mulf %6, %6 : vector<16x128xf32>
    %cst_17 = arith.constant dense<0.000000e+00> : vector<128xf32>
    %21 = vector.multi_reduction <add>, %20, %cst_17 [0] : vector<16x128xf32> to vector<128xf32>
    %22 = vector.shape_cast %21 : vector<128xf32> to vector<1x128xf32>
    %cst_18 = arith.constant 1.000000e-24 : f32
    %23 = vector.broadcast %cst_18 : f32 to vector<1x128xf32>
    %24 = arith.maximumf %19, %23 : vector<1x128xf32>
    %25 = math.rsqrt %24 : vector<1x128xf32>
    %26 = vector.broadcast %25 : vector<1x128xf32> to vector<16x128xf32>
    %27 = arith.mulf %4, %26 : vector<16x128xf32>
    %28 = arith.truncf %27 : vector<16x128xf32> to vector<16x128xbf16>
    %cst_19 = arith.constant 1.000000e-24 : f32
    %29 = vector.broadcast %cst_19 : f32 to vector<1x128xf32>
    %30 = arith.maximumf %22, %29 : vector<1x128xf32>
    %31 = math.rsqrt %30 : vector<1x128xf32>
    %32 = arith.mulf %31, %9 : vector<1x128xf32>
    %33 = vector.broadcast %32 : vector<1x128xf32> to vector<16x128xf32>
    %34 = arith.mulf %6, %33 : vector<16x128xf32>
    %35 = arith.truncf %34 : vector<16x128xf32> to vector<16x128xbf16>
    %cst_20 = arith.constant dense<0.000000e+00> : vector<128x128xf32>
    %36 = tpu.matmul %28, %35, %cst_20 {dimension_numbers = #tpu.dot_dimension_numbers<[0], [0], [1], [1], [0, 1, 1, 1], [], []>} : vector<16x128xbf16>, vector<16x128xbf16>, vector<128x128xf32> -> vector<128x128xf32>
    %cst_21 = arith.constant dense<0xFF800000> : vector<128xf32>
    %37 = vector.multi_reduction <maximumf>, %36, %cst_21 [1] : vector<128x128xf32> to vector<128xf32>
    %38 = vector.shape_cast %37 : vector<128xf32> to vector<128x1xf32>
    %39 = vector.broadcast %38 : vector<128x1xf32> to vector<128x128xf32>
    %40 = arith.subf %36, %39 : vector<128x128xf32>
    %41 = math.exp %40 : vector<128x128xf32>
    %42 = arith.mulf %41, %16 : vector<128x128xf32>
    %cst_22 = arith.constant dense<0.000000e+00> : vector<128xf32>
    %43 = vector.multi_reduction <add>, %42, %cst_22 [1] : vector<128x128xf32> to vector<128xf32>
    %44 = vector.shape_cast %43 : vector<128xf32> to vector<128x1xf32>
    %45 = tpu.reciprocal %44 {approx = true} : vector<128x1xf32> -> vector<128x1xf32>
    %46 = vector.broadcast %45 : vector<128x1xf32> to vector<128x128xf32>
    %47 = arith.mulf %42, %46 : vector<128x128xf32>
    %48 = arith.truncf %8 : vector<16x128xf32> to vector<16x128xbf16>
    %49 = arith.truncf %47 : vector<128x128xf32> to vector<128x128xbf16>
    %cst_23 = arith.constant dense<0.000000e+00> : vector<16x128xf32>
    %50 = tpu.matmul %48, %49, %cst_23 {dimension_numbers = #tpu.dot_dimension_numbers<[1], [1], [0], [0], [0, 0, 1, 0], [], []>} : vector<16x128xbf16>, vector<128x128xbf16>, vector<16x128xf32> -> vector<16x128xf32>
    %51 = arith.truncf %50 : vector<16x128xf32> to vector<16x128xbf16>
    %c0_24 = arith.constant 0 : index
    %c0_25 = arith.constant 0 : index
    %52 = vector.load %arg11[%c0_24, %c0_25] : memref<16x128xbf16, #tpu.memory_space<vmem>>, vector<16x128xbf16>
    tpu.vector_store %arg11[%c0_24, %c0_25], %51 {strides = array<i32>} : memref<16x128xbf16, #tpu.memory_space<vmem>>, vector<16x128xbf16>,
    %c0_26 = arith.constant 0 : index
    %c0_27 = arith.constant 0 : index
    %53 = vector.load %arg11[%c0_26, %c0_27] : memref<16x128xbf16, #tpu.memory_space<vmem>>, vector<16x128xbf16>
    %c0_28 = arith.constant 0 : index
    %c0_29 = arith.constant 0 : index
    %54 = vector.load %arg5[%c0_28, %c0_29] : memref<128x128xbf16, #tpu.memory_space<vmem>>, vector<128x128xbf16>
    %cst_30 = arith.constant dense<0.000000e+00> : vector<16x128xf32>
    %55 = tpu.matmul %53, %54, %cst_30 {dimension_numbers = #tpu.dot_dimension_numbers<[1], [0], [0], [1], [0, 0, 1, 1], [], []>} : vector<16x128xbf16>, vector<128x128xbf16>, vector<16x128xf32> -> vector<16x128xf32>
    %c0_31 = arith.constant 0 : index
    %c0_32 = arith.constant 0 : index
    %56 = vector.load %arg6[%c0_31, %c0_32] : memref<1x128xf32, #tpu.memory_space<vmem>>, vector<1x128xf32>
    %57 = vector.broadcast %56 : vector<1x128xf32> to vector<16x128xf32>
    %58 = arith.addf %55, %57 : vector<16x128xf32>
    %59 = vector.shape_cast %58 : vector<16x128xf32> to vector<1x16x128xf32>
    %c0_33 = arith.constant 0 : index
    %c0_34 = arith.constant 0 : index
    %c0_35 = arith.constant 0 : index
    %60 = vector.load %arg10[%c0_33, %c0_34, %c0_35] : memref<1x16x128xf32, #tpu.memory_space<vmem>>, vector<1x16x128xf32>
    tpu.vector_store %arg10[%c0_33, %c0_34, %c0_35], %59 {strides = array<i32>} : memref<1x16x128xf32, #tpu.memory_space<vmem>>, vector<1x16x128xf32>,
    return
  }
  func.func @transform_0(%arg0: i32) -> (i32, i32, i32) {
    %c0_i32 = arith.constant 0 : i32
    %c0_i32_0 = arith.constant 0 : i32
    %c0_i32_1 = arith.constant 0 : i32
    return %arg0, %c0_i32, %c0_i32_0 : i32, i32, i32
  }
  func.func @transform_1(%arg0: i32) -> (i32, i32) {
    %c0_i32 = arith.constant 0 : i32
    %c0_i32_0 = arith.constant 0 : i32
    %c0_i32_1 = arith.constant 0 : i32
    return %c0_i32, %c0_i32_0 : i32, i32
  }
  func.func @transform_2(%arg0: i32) -> (i32, i32) {
    %c0_i32 = arith.constant 0 : i32
    %c0_i32_0 = arith.constant 0 : i32
    %c0_i32_1 = arith.constant 0 : i32
    return %c0_i32, %c0_i32_0 : i32, i32
  }
  func.func @transform_3(%arg0: i32) -> (i32, i32) {
    %c0_i32 = arith.constant 0 : i32
    %c0_i32_0 = arith.constant 0 : i32
    %c0_i32_1 = arith.constant 0 : i32
    return %c0_i32, %c0_i32_0 : i32, i32
  }
  func.func @transform_4(%arg0: i32) -> (i32, i32) {
    %c0_i32 = arith.constant 0 : i32
    %c0_i32_0 = arith.constant 0 : i32
    %c0_i32_1 = arith.constant 0 : i32
    return %c0_i32, %c0_i32_0 : i32, i32
  }
  func.func @transform_5(%arg0: i32) -> (i32, i32) {
    %c0_i32 = arith.constant 0 : i32
    %c0_i32_0 = arith.constant 0 : i32
    %c0_i32_1 = arith.constant 0 : i32
    return %c0_i32, %c0_i32_0 : i32, i32
  }
  func.func @transform_6(%arg0: i32) -> (i32, i32) {
    %c0_i32 = arith.constant 0 : i32
    %c0_i32_0 = arith.constant 0 : i32
    %c0_i32_1 = arith.constant 0 : i32
    return %c0_i32, %c0_i32_0 : i32, i32
  }
  func.func @transform_7(%arg0: i32) -> (i32, i32) {
    %c0_i32 = arith.constant 0 : i32
    %c0_i32_0 = arith.constant 0 : i32
    %c0_i32_1 = arith.constant 0 : i32
    return %c0_i32, %c0_i32_0 : i32, i32
  }
  func.func @transform_8(%arg0: i32) -> (i32, i32) {
    %c0_i32 = arith.constant 0 : i32
    %c0_i32_0 = arith.constant 0 : i32
    %c0_i32_1 = arith.constant 0 : i32
    return %c0_i32, %c0_i32_0 : i32, i32
  }
  func.func @transform_9(%arg0: i32) -> (i32, i32, i32) {
    %c0_i32 = arith.constant 0 : i32
    %c0_i32_0 = arith.constant 0 : i32
    %c0_i32_1 = arith.constant 0 : i32
    return %arg0, %c0_i32, %c0_i32_0 : i32, i32, i32
  }
}

</mosaic_0001>

<bundles_post_ra>
// kernel: tpu_custom_call.1
= control target key start
LH: loop header
LB: loop body
LE: loop exit
PB: predicated region body
PF: predicated region fallthrough
CT: control target
= control target key end

     0   :  { %14 = vsyncpa [#allocation4], 0  ;;  %s2714_s0 = inlined_call_operand.hbm [shape: f32[2,16,128], index: 0, kind: input, shape index: {}]   ;;  %s2715_s1 = inlined_call_operand.vmem [shape: bf16[128,128], index: 1, kind: input, shape index: {}]   ;;  %s2716_s2 = inlined_call_operand.vmem [shape: bf16[128,128], index: 2, kind: input, shape index: {}]   ;;  %s2717_s3 = inlined_call_operand.hbm [shape: bf16[128,128], index: 3, kind: input, shape index: {}]   ;;  %s2718_s4 = inlined_call_operand.hbm [shape: bf16[128,128], index: 4, kind: input, shape index: {}]   ;;  %s2719_s5 = inlined_call_operand.vmem [shape: f32[1,128], index: 5, kind: input, shape index: {}]   ;;  %s2720_s6 = inlined_call_operand.vmem [shape: f32[1,128], index: 6, kind: input, shape index: {}]   ;;  %s2721_s7 = inlined_call_operand.vmem [shape: f32[1,128], index: 7, kind: input, shape index: {}]   ;;  %s2722_s8 = inlined_call_operand.vmem [shape: f32[128,1], index: 8, kind: input, shape index: {}]   ;;  %s2723_s9 = inlined_call_operand.hbm [shape: f32[2,16,128], index: 9, kind: output, shape index: {}]  }
   0x1   :  { %16 = vsyncpa [#allocation4 + $0x1], 0 }
   0x2   :  { %17 = vsyncpa [#allocation7], 0 }
   0x3   :  { %18 = vsyncpa [#allocation5], 0 }
   0x4   :  { %20 = vsyncpa [#allocation5 + $0x1], 0  ;;  %s2104_s30 = smov 0   ;;  %s2106_s10 = smov 0  }
   0x5   :  { %s2108_s11 = smov 0   ;;  %s2110_s12 = smov 0  }
   0x6 LB: > { %s2125_s13 = sadd.s32 4294967295, %s2039_s12   ;;  %s1455_s14 = sadd.s32 4294967294, %s2039_s12   ;;  %s2039_s12 = sphi %s2110_s12, %s2746_s12   ;;  %s2035_s11 = sphi %s2108_s11, %s2745_s11   ;;  %s2031_s10 = sphi %s2106_s10, %s2744_s10   ;;  %s2027_s30 = sphi %s2104_s30, %s2743_s30  }
   0x7   : > { %p46_p0 = scmp.ne.s32.totalorder %s2031_s10, %s2027_s30  ;;  %p2724_p1 = scmp.eq.s32.totalorder %s2125_s13, 0 }
   0x8   : > { %p244_p3 = scmp.eq.s32.totalorder %s1455_s14, 1  ;;  %p1456_p5 = scmp.ge.s32.totalorder %s2039_s12, 1 }
   0x9   : > { %p2134_p4 = por %p2724_p1, %p46_p0  ;;  %p251_p7 = scmp.lt.s32.totalorder %s2039_s12, 3 }
   0xa   : > { %p2139_p6 = por %p244_p3, %p46_p0  ;;  %s2041_s18 = smov [#allocation6]  }
   0xb   : > { %s2728_s15 = scalar_select %p2134_p4, 1, 0 }
   0xc   : > { %s2729_s16 = scalar_select %p2139_p6, 1, 0 }
   0xd   : > { %p2144_p8 = pnand %p1456_p5, %p251_p7  ;;  %s269_s19 = sshll.u32 %s2041_s18, 4  ;;  %s2148_s19 = int_to_ptr.vmem [resolvable:$true] %s269_s19 }
   0xe   : > { %2730 = sst [smem:[#allocation13_spill]] %s2729_s16  ;;  %s2042_s21 = smov [#allocation8]  }
   0xf   : > { %p1717_p9 = pneg %p2144_p8  ;;  %s282_s22 = sshll.u32 %s2042_s21, 4  ;;  %s2159_s22 = int_to_ptr.vmem [resolvable:$true] %s282_s22 }
  0x10   : > { %s1883_s25 = scalar_lea.hbm %s2717_s3, 1024 }
  0x11   : > { %p2155_p11 = pnand %p1717_p9, %p2724_p1  ;;  %p1884_p12 = scmp.ne.s32.totalorder %s2717_s3, %s1883_s25 }
  0x12   : > { %p1890_p5 = scmp.lt.u32.totalorder %s1883_s25, %s2717_s3 }
  0x13   : > { %p1885_p13 = pneg %p2155_p11 }
  0x15   : > { %p1886_p0 = pnand %p1885_p13, %p1884_p12 }
  0x17   : > { %p1887_p3 = pneg %p1886_p0 }
  0x19   : > { %p1892_p7 = pnand %p1890_p5, %p1887_p3 }
  0x1b   : > { %1895 = shalt.err (!%p1892_p7)
}
  0x1c   : > { %s1896_s14 = scalar_lea.vmem %s2148_s19, 1024  ;;  %p1904_p2 = scmp.lt.s32.totalorder %s2148_s19, %s2148_s19 }
  0x1d   : > { %p1897_p9 = scmp.ne.s32.totalorder %s2148_s19, %s1896_s14  ;;  %p1905_p12 = scmp.lt.s32.totalorder %s1896_s14, %s1896_s14 }
  0x1f   : > { %p1899_p10 = pnand %p1897_p9, %p1885_p13  ;;  %p1906_p0 = por %p1905_p12, %p1904_p2 }
  0x21   : > { %p1900_p1 = pneg %p1899_p10 }
  0x23   : > { %p1907_p6 = pnand %p1906_p0, %p1900_p1 }
  0x25   : > { %1910 = shalt.err (!%p1907_p6)
}
  0x26   : > { %s2043_s18 = smov 64   ;;  %s2044_s21 = smov 4  }
  0x27   : > { %1720 = dma.hbm_to_vmem [thread:$0]  (!%p2155_p11), %s2717_s3, 1024, %s2148_s19, [#allocation7], %s2043_s18, %s2043_s18, %s2044_s21  }
  0x28   : > { %s1911_s27 = scalar_lea.hbm %s2718_s4, 1024 }
  0x29   : > { %p1912_p2 = scmp.ne.s32.totalorder %s2718_s4, %s1911_s27  ;;  %p1918_p10 = scmp.lt.u32.totalorder %s1911_s27, %s2718_s4 }
  0x2b   : > { %p1914_p1 = pnand %p1912_p2, %p1885_p13 }
  0x2d   : > { %p1915_p6 = pneg %p1914_p1 }
  0x2f   : > { %p1920_p3 = pnand %p1918_p10, %p1915_p6 }
  0x31   : > { %1923 = shalt.err (!%p1920_p3)
}
  0x32   : > { %s1924_s19 = scalar_lea.vmem %s2159_s22, 1024  ;;  %p1932_p12 = scmp.lt.s32.totalorder %s2159_s22, %s2159_s22 }
  0x33   : > { %p1925_p5 = scmp.ne.s32.totalorder %s2159_s22, %s1924_s19  ;;  %p1933_p0 = scmp.lt.s32.totalorder %s1924_s19, %s1924_s19 }
  0x35   : > { %p1927_p7 = pnand %p1925_p5, %p1885_p13  ;;  %p1934_p2 = por %p1933_p0, %p1932_p12 }
  0x37   : > { %p1928_p9 = pneg %p1927_p7 }
  0x39   : > { %p1935_p1 = pnand %p1934_p2, %p1928_p9 }
  0x3b   : > { %1938 = shalt.err (!%p1935_p1)
}
  0x3c   : > { %1723 = dma.hbm_to_vmem [thread:$0]  (!%p2155_p11), %s2718_s4, 1024, %s2159_s22, [#allocation7], %s2043_s18, %s2043_s18, %s2044_s21  }
  0x3d   : > { %s2214_s24 = sadd.s32 1, %s2039_s12   ;;  %s33_s20 = sadd.s32 1, %s2035_s11 }
  0x3e   : > { %s30_s25 = ssub.s32 %s2039_s12, %s2214_s24  ;;  %p40_p13 = scmp.ne.s32.totalorder %s2035_s11, %s2031_s10 }
  0x3f   : > { %p31_p6 = scmp.eq.s32.totalorder %s30_s25, 0  ;;  %p41_p10 = scmp.eq.s32.totalorder %s2039_s12, 0 }
  0x40   : > { %p2733_p3 = scmp.eq.s32.totalorder %s2125_s13, 1  ;;  %p1734_p7 = scmp.lt.s32.totalorder %s2039_s12, 2 }
  0x41   : > { %s2230_s27 = scalar_select %p31_p6, %s2035_s11, %s33_s20  }
  0x42   : > { %p2224_p5 = por %p2733_p3, %p40_p13  ;;  %p42_p9 = por %p41_p10, %p40_p13 }
  0x43   : > { %s308_s28 = sand.u32 1, %s2035_s11   ;;  %s1531_s22 = sshll.u32 %s2039_s12, 8 }
  0x44   : > { %s2734_s26 = scalar_select %p2224_p5, 1, 0 }
  0x45   : > { %s1460_s29 = sshll.u32 %s308_s28, 4  ;;  %s2237_s14 = scalar_lea.hbm %s2714_s0, %s1531_s22 }
  0x46   : > { %s312_s19 = scalar_lea.vmem [#allocation3], %s1460_s29  ;;  %p2241_p11 = pnand %p1734_p7, %p42_p9 }
  0x47   : > { %s319_s16 = sshll.u32 %s312_s19, 4  ;;  %s2245_s20 = scalar_lea.sflag [#allocation4], %s308_s28  ;;  %s2239_s16 = int_to_ptr.vmem [resolvable:$true] %s319_s16 }
  0x48   : > { %s1939_s25 = scalar_lea.hbm %s2237_s14, 256  ;;  %p1941_p0 = pneg %p2241_p11 }
  0x49   : > { %p1940_p12 = scmp.ne.s32.totalorder %s2237_s14, %s1939_s25  ;;  %s1944_s18 = scalar_lea.hbm %s2714_s0, 512 }
  0x4a   : > { %p1945_p13 = scmp.lt.u32.totalorder %s2237_s14, %s2714_s0  ;;  %p1946_p6 = scmp.lt.u32.totalorder %s1944_s18, %s1939_s25 }
  0x4b   : > { %p1942_p2 = pnand %p1941_p0, %p1940_p12  ;;  %p1948_p3 = scmp.lt.u32.totalorder %s1939_s25, %s2237_s14 }
  0x4c   : > { %p1947_p10 = por %p1946_p6, %p1945_p13 }
  0x4d   : > { %p1943_p1 = pneg %p1942_p2 }
  0x4e   : > { %p1949_p7 = por %p1948_p3, %p1947_p10 }
  0x50   : > { %p1950_p9 = pnand %p1949_p7, %p1943_p1 }
  0x52   : > { %1953 = shalt.err (!%p1950_p9)
}
  0x53   : > { %s1954_s28 = scalar_lea.vmem %s2239_s16, 256  ;;  %s2045_s29 = smov [#allocation3]  }
  0x54   : > { %p1955_p12 = scmp.ne.s32.totalorder %s2239_s16, %s1954_s28  ;;  %s1959_s22 = sshll.u32 %s2045_s29, 4  ;;  %s1960_s22 = int_to_ptr.vmem [resolvable:$false] %s1959_s22 }
  0x55   : > { %s1961_s21 = scalar_lea.vmem %s1960_s22, 512  ;;  %p1962_p4 = scmp.lt.s32.totalorder %s2239_s16, %s1960_s22 }
  0x56   : > { %p1957_p2 = pnand %p1955_p12, %p1941_p0  ;;  %p1963_p13 = scmp.lt.s32.totalorder %s1961_s21, %s1954_s28 }
  0x58   : > { %p1958_p5 = pneg %p1957_p2  ;;  %p1964_p6 = por %p1963_p13, %p1962_p4 }
  0x5a   : > { %p1965_p10 = pnand %p1964_p6, %p1958_p5 }
  0x5c   : > { %1968 = shalt.err (!%p1965_p10)
}
  0x5d   : > { %s2046_s25 = smov 128   ;;  %s2047_s18 = smov 8  }
  0x5e   : > { %1727 = dma.hbm_to_vmem [thread:$0]  (!%p2241_p11), %s2237_s14, 256, %s2239_s16, %s2245_s20, %s2046_s25, %s2046_s25, %s2047_s18  }
  0x5f   : > { %331 = sbr.rel (%p2144_p8) target bundleno = 1577 (0x629), region = 56  ;;  %s2276_s19 = sand.u32 (!%p2144_p8), 1, %s2031_s10  }
  0x60   : > { %s1464_s28 = sshll.u32 (!%p2144_p8), %s2276_s19, 4  ;;  %s334_s29 = scalar_lea.sflag (!%p2144_p8), [#allocation4], %s2276_s19 }
  0x61   : > { %s2282_s22 = scalar_lea.vmem (!%p2144_p8), [#allocation3], %s1464_s28  ;;  %p2736_p4 = scmp.ne.s32.totalorder (!%p2144_p8), %s2728_s15, 0 }
  0x66   : > { %2014 = dma.done.wait (%p2736_p4), %s334_s29, 256  }
  0x67   : > { %2016 = vsyncadd (%p2736_p4), %s334_s29, 4294967040  ;;  %p2737_p5 = scmp.eq.s32.totalorder %s2125_s13, 0 }
  0x69   : > { %2018 = dma.done.wait (%p2737_p5), [#allocation7], 2048   ;;  %p2738_p8 = pmov %p2737_p5 }
  0x6a   : > { %v2048_v0 = vmov 0.0   ;;  %vm2049_vm0 = vmmov 0   ;;  %v1783_v1 = vld [vmem:[%s2715_s1] sm:$0xff]   ;;  %v1784_v2 = vld [vmem:[%s2715_s1 + $0x8] sm:$0xff]   ;;  %v1785_v3 = vld [vmem:[%s2715_s1 + $0x10] sm:$0xff]   ;;  %v877_v49 = vlaneseq  ;;  %v2050_v58 = vmov 0  }
  0x6b   : > { %2020 = vsyncadd (%p2738_p8), [#allocation7], 4294965248  ;;  %1587 = vmatprep.subr.bf16.mxu0 %v2048_v0  ;;  %1603 = vmatprep.mubr.msk.bf16.mxu0 %vm2049_vm0, %v2048_v0  ;;  %v1791_v4 = vld [vmem:[%s2716_s2] sm:$0xff]   ;;  %v1786_v5 = vld [vmem:[%s2715_s1 + $0x18] sm:$0xff]   ;;  %vm900_vm1 = vcmask 130048   ;;  %s379_s21 = scalar_lea.vmem [#allocation9], %s1464_s28 }
  0x6c   : > { %1607 = vmatprep.subr.bf16.mxu1 %v2048_v0  ;;  %1623 = vmatprep.mubr.msk.bf16.mxu1 %vm2049_vm0, %v2048_v0  ;;  %v1792_v6 = vld [vmem:[%s2716_s2 + $0x8] sm:$0xff]   ;;  %v1787_v7 = vld [vmem:[%s2715_s1 + $0x20] sm:$0xff]   ;;  %v1793_v8 = vld [vmem:[%s2716_s2 + $0x10] sm:$0xff]   ;;  %v878_v53 = vshrl.u32 %v877_v49, 7  ;;  %s1363_s25 = sshll.u32 %s379_s21, 4  ;;  %s1532_s18 = sshll.u32 %s2125_s13, 8  ;;  %s2665_s25 = int_to_ptr.vmem [resolvable:$true] %s1363_s25 }
  0x6d   : > { %1588 = vmatpush3.bf16.msra.mxu0 %v1783_v1  ;;  %1608 = vmatpush3.bf16.msra.mxu1 %v1791_v4  ;;  %v1788_v9 = vld [vmem:[%s2715_s1 + $0x28] sm:$0xff]   ;;  %v1794_v10 = vld [vmem:[%s2716_s2 + $0x18] sm:$0xff]   ;;  %v1789_v11 = vld [vmem:[%s2715_s1 + $0x30] sm:$0xff]   ;;  %s2670_s15 = scalar_lea.hbm %s2723_s9, %s1532_s18  ;;  %s1350_s28 = scalar_lea.sflag [#allocation5], %s2276_s19 }
  0x6e   : > { %1589 = vmatprep.subr.bf16.mxu0 %v2048_v0  ;;  %1609 = vmatprep.subr.bf16.mxu1 %v2048_v0  ;;  %v1795_v12 = vld [vmem:[%s2716_s2 + $0x20] sm:$0xff]   ;;  %v1790_v13 = vld [vmem:[%s2715_s1 + $0x38] sm:$0xff]   ;;  %v1796_v16 = vld [vmem:[%s2716_s2 + $0x28] sm:$0xff]   ;;  %v879_v55 = vsub.s32 0, %v878_v53  ;;  %s1969_s13 = scalar_lea.vmem %s2665_s25, 256  ;;  %p2739_p0 = scmp.ne.s32.totalorder %s2734_s26, 0 }
  0x6f   : > { %v381_v14 = vld [vmem:[%s2282_s22] sm:$0xff]  ;;  %v382_v15 = vld [vmem:[%s2282_s22 + $0x8] sm:$0xff]  ;;  %1781 = vset.pattern.permute.xlu1 %v2050_v58  ;;  %p1970_p11 = scmp.ne.s32.totalorder %s2665_s25, %s1969_s13  ;;  %s2051_s17 = smov [#allocation9]  }
  0x70   : > { %v2354_v17 = vpack.c.bf16 %v382_v15, %v381_v14  ;;  %v1797_v18 = vld [vmem:[%s2716_s2 + $0x30] sm:$0xff]   ;;  %v1798_v19 = vld [vmem:[%s2716_s2 + $0x38] sm:$0xff]   ;;  %v699_v54 = vld [vmem:[%s2720_s6] sm:$0x1]  ;;  %s1973_s14 = sshll.u32 %s2051_s17, 4  ;;  %s1974_s14 = int_to_ptr.vmem [resolvable:$false] %s1973_s14 }
  0x71   : > { %1590 = vmatpush3.bf16.msra.mxu0 %v1784_v2  ;;  %1610 = vmatpush3.bf16.msra.mxu1 %v1792_v6  ;;  %v700_v56 = vld [vmem:[%s2722_s8] sm:$0xff]  ;;  %v701_v60 = vld [vmem:[%s2722_s8 + $0x8] sm:$0xff]  ;;  %v703_v1 = vld [vmem:[%s2722_s8 + $0x18] sm:$0xff]  ;;  %p1971_p1 = pnand %p1970_p11, %p2739_p0  ;;  %s1975_s16 = scalar_lea.vmem %s1974_s14, 512 }
  0x72   : > { %1591 = vmatprep.subr.bf16.mxu0 %v2048_v0  ;;  %1611 = vmatprep.subr.bf16.mxu1 %v2048_v0  ;;  %v707_v4 = vld [vmem:[%s2722_s8 + $0x38] sm:$0xff]  ;;  %p1976_p7 = scmp.lt.s32.totalorder %s2665_s25, %s1974_s14  ;;  %p1977_p9 = scmp.lt.s32.totalorder %s1975_s16, %s1969_s13 }
  0x73   : > { %719 = vperm.xlu1 %1781, %v700_v56   ;;  %v711_v6 = vld [vmem:[%s2722_s8 + $0x58] sm:$0xff]  ;;  %p1972_p3 = pneg %p1971_p1 }
  0x74   : > { %p1978_p12 = por %p1977_p9, %p1976_p7 }
  0x75   : > { %1592 = vmatpush3.bf16.msra.mxu0 %v1785_v3  ;;  %1612 = vmatpush3.bf16.msra.mxu1 %v1793_v8  ;;  %v705_v3 = vld [vmem:[%s2722_s8 + $0x28] sm:$0xff]  ;;  %v704_v8 = vld [vmem:[%s2722_s8 + $0x20] sm:$0xff] }
  0x76   : > { %1593 = vmatprep.subr.bf16.mxu0 %v2048_v0  ;;  %1613 = vmatprep.subr.bf16.mxu1 %v2048_v0  ;;  %p1979_p2 = pnand %p1978_p12, %p1972_p3 }
  0x77   : > { %724 = vperm.xlu1 %1781, %v701_v60  }
  0x79   : > { %1594 = vmatpush3.bf16.msra.mxu0 %v1786_v5  ;;  %1614 = vmatpush3.bf16.msra.mxu1 %v1794_v10  ;;  %v709_v5 = vld [vmem:[%s2722_s8 + $0x48] sm:$0xff]  ;;  %v708_v10 = vld [vmem:[%s2722_s8 + $0x40] sm:$0xff] }
  0x7a   : > { %1595 = vmatprep.subr.bf16.mxu0 %v2048_v0  ;;  %1615 = vmatprep.subr.bf16.mxu1 %v2048_v0 }
  0x7b   : > { %734 = vperm.xlu1 %1781, %v703_v1  }
  0x7d   : > { %1596 = vmatpush3.bf16.msra.mxu0 %v1787_v7  ;;  %1616 = vmatpush3.bf16.msra.mxu1 %v1795_v12  ;;  %v702_v7 = vld [vmem:[%s2722_s8 + $0x10] sm:$0xff]  ;;  %v712_v12 = vld [vmem:[%s2722_s8 + $0x60] sm:$0xff] }
  0x7e   : > { %1597 = vmatprep.subr.bf16.mxu0 %v2048_v0  ;;  %1617 = vmatprep.subr.bf16.mxu1 %v2048_v0 }
  0x7f   : > { %744 = vperm.xlu1 %1781, %v705_v3  }
  0x81   : > { %1598 = vmatpush3.bf16.msra.mxu0 %v1788_v9  ;;  %1618 = vmatpush3.bf16.msra.mxu1 %v1796_v16  ;;  %v706_v9 = vld [vmem:[%s2722_s8 + $0x30] sm:$0xff] }
  0x82   : > { %1599 = vmatprep.subr.bf16.mxu0 %v2048_v0  ;;  %1619 = vmatprep.subr.bf16.mxu1 %v2048_v0 }
  0x83   : > { %754 = vperm.xlu1 %1781, %v707_v4  }
  0x85   : > { %1600 = vmatpush3.bf16.msra.mxu0 %v1789_v11  ;;  %1620 = vmatpush3.bf16.msra.mxu1 %v1797_v18  ;;  %v710_v11 = vld [vmem:[%s2722_s8 + $0x50] sm:$0xff] }
  0x86   : > { %1601 = vmatprep.subr.bf16.mxu0 %v2048_v0  ;;  %1621 = vmatprep.subr.bf16.mxu1 %v2048_v0 }
  0x87   : > { %764 = vperm.xlu1 %1781, %v709_v5  }
  0x89   : > { %1602 = vmatpush3.bf16.msra.mxu0 %v1790_v13  ;;  %1622 = vmatpush3.bf16.msra.mxu1 %v1798_v19 }
  0x8a   : > { %1627 = vmatprep.subr.bf16.mxu0 %v2048_v0 }
  0x8b   : > { %774 = vperm.xlu1 %1781, %v711_v6  }
  0x8c   : > { %1604 = vmatmul.mubr.bf16.vlgmr.msra.gmra.mrb[0].mxu0 %v2354_v17  ;;  %1624 = vmatmul.mubr.bf16.vlgmr.msra.gmra.mrb[0].mxu1 %v2354_v17 }
  0x8d   : > { %1643 = vmatprep.mubr.msk.bf16.mxu0 %vm2049_vm0, %v2048_v0 }
  0xf2   : > { %v720_v49 = vpop.permute.xlu1 %719 }
 0x15f   : > { %v482_v20 = vpop.f32.mrb[0].mxu0  ;;  %v587_v29 = vpop.f32.mrb[0].mxu1 }
 0x160   : > { %v1605_v21 = vpop.f32.mrb[1].mxu0  ;;  %v851_v23 = vmul.f32 %v482_v20, %v482_v20  ;;  %v860_v30 = vmul.f32 %v587_v29, %v587_v29  ;;  %v1625_v31 = vpop.f32.mrb[1].mxu1 }
 0x161   : > { %v485_v22 = vpop.f32.mrb[2].mxu0  ;;  %v590_v33 = vpop.f32.mrb[2].mxu1 }
 0x162   : > { %v852_v24 = vmul.f32 %v485_v22, %v485_v22  ;;  %v1606_v25 = vpop.f32.mrb[3].mxu0  ;;  %v861_v34 = vmul.f32 %v590_v33, %v590_v33  ;;  %v1626_v35 = vpop.f32.mrb[3].mxu1 }
 0x164   : > { %v853_v26 = vadd.f32 %v852_v24, %v851_v23  ;;  %v862_v37 = vadd.f32 %v861_v34, %v860_v30 }
 0x166   : > { %v854_v27 = vrot.slane %v853_v26, 4  ;;  %v863_v39 = vrot.slane %v862_v37, 4 }
 0x168   : > { %v855_v28 = vadd.f32 %v854_v27, %v853_v26  ;;  %v864_v41 = vadd.f32 %v863_v39, %v862_v37  ;;  %v1799_v39 = vld [vmem:[#allocation6] sm:$0xff]  }
 0x169   : > { %1628 = vmatpush3.bf16.msra.mxu0 %v1799_v39 }
 0x16a   : > { %v856_v32 = vrot.slane %v855_v28, 2  ;;  %v865_v43 = vrot.slane %v864_v41, 2  ;;  %1629 = vmatprep.subr.bf16.mxu0 %v2048_v0 }
 0x16c   : > { %v857_v36 = vadd.f32 %v856_v32, %v855_v28  ;;  %v866_v44 = vadd.f32 %v865_v43, %v864_v41  ;;  %v1800_v41 = vld [vmem:[#allocation6 + $0x8] sm:$0xff]   ;;  %v1802_v43 = vld [vmem:[#allocation6 + $0x18] sm:$0xff]  }
 0x16d   : > { %1630 = vmatpush3.bf16.msra.mxu0 %v1800_v41 }
 0x16e   : > { %v858_v38 = vrot.slane %v857_v36, 1  ;;  %v867_v45 = vrot.slane %v866_v44, 1  ;;  %1631 = vmatprep.subr.bf16.mxu0 %v2048_v0 }
 0x170   : > { %v859_v40 = vadd.f32 %v858_v38, %v857_v36  ;;  %v868_v46 = vadd.f32 %v867_v45, %v866_v44  ;;  %v713_v38 = vld [vmem:[%s2722_s8 + $0x68] sm:$0xff]  ;;  %v1803_v44 = vld [vmem:[#allocation6 + $0x20] sm:$0xff]  }
 0x171   : > { %v1804_v45 = vld [vmem:[#allocation6 + $0x28] sm:$0xff]  }
 0x172   : > { %v869_v42 = vmax.f32 %v859_v40, 1e-24  ;;  %v874_v47 = vmax.f32 %v868_v46, 1e-24  ;;  %v714_v40 = vld [vmem:[%s2722_s8 + $0x70] sm:$0xff] }
 0x173   : > { %v1805_v46 = vld [vmem:[#allocation6 + $0x30] sm:$0xff]  }
 0x174   : > { %1815 = vrsqrt.f32 %v869_v42  ;;  %v1801_v42 = vld [vmem:[#allocation6 + $0x10] sm:$0xff]  }
 0x175   : > { %1817 = vrsqrt.f32 %v874_v47  ;;  %1632 = vmatpush3.bf16.msra.mxu0 %v1801_v42  ;;  %v1806_v47 = vld [vmem:[#allocation6 + $0x38] sm:$0xff]  }
 0x176   : > { %1633 = vmatprep.subr.bf16.mxu0 %v2048_v0 }
 0x179   : > { %1634 = vmatpush3.bf16.msra.mxu0 %v1802_v43 }
 0x17a   : > { %1635 = vmatprep.subr.bf16.mxu0 %v2048_v0 }
 0x17d   : > { %1636 = vmatpush3.bf16.msra.mxu0 %v1803_v44 }
 0x17e   : > { %v1816_v48 = vpop.eup %1815  ;;  %1637 = vmatprep.subr.bf16.mxu0 %v2048_v0 }
 0x17f   : > { %v872_v50 = vmul.f32 %v1816_v48, %v485_v22  ;;  %v871_v51 = vmul.f32 %v1816_v48, %v482_v20  ;;  %v1818_v57 = vpop.eup %1817  ;;  %v715_v48 = vld [vmem:[%s2722_s8 + $0x78] sm:$0xff] }
 0x180   : > { %v876_v59 = vmul.f32 %v1818_v57, %v699_v54 }
 0x181   : > { %v873_v52 = vpack.c.bf16 %v872_v50, %v871_v51  ;;  %1638 = vmatpush3.bf16.msra.mxu0 %v1804_v45  ;;  %v725_v50 = vpop.permute.xlu1 %724 }
 0x182   : > { %v880_v61 = vrot.slane %v876_v59, %v879_v55  ;;  %1639 = vmatprep.subr.bf16.mxu0 %v2048_v0 }
 0x183   : > { %884 = vxpose.xlu0.c.b16.start.end [1/1] (short) %v873_v52, 128 }
 0x184   : > { %v881_v62 = vmul.f32 %v880_v61, %v587_v29  ;;  %v882_v63 = vmul.f32 %v880_v61, %v590_v33 }
 0x185   : > { %1640 = vmatpush3.bf16.msra.mxu0 %v1805_v46  ;;  %v735_v52 = vpop.permute.xlu1 %734 }
 0x186   : > { %v883_v2 = vpack.c.bf16 %v882_v63, %v881_v62  ;;  %1641 = vmatprep.subr.bf16.mxu0 %v2048_v0 }
 0x188   : > { %1647 = vmatprep.subr.bf16.mxu1 %v883_v2 }
 0x189   : > { %1648 = vmatpush3.bf16.msra.mxu1 %v883_v2  ;;  %1642 = vmatpush3.bf16.msra.mxu0 %v1806_v47  ;;  %v2492_v54 = vpop.permute.xlu1 %744 }
 0x18a   : > { %1665 = vmatprep.subr.bf16.mxu1 %v2048_v0  ;;  %1685 = vmatprep.subr.bf16.mxu0 %v2048_v0 }
 0x18c   : > { %1782 = vset.pattern.permute.xlu0 %v2050_v58  ;;  %1644 = vmatmul.mubr.bf16.vlgmr.msra.gmra.mrb[4].mxu0 %v2354_v17 }
 0x18d   : > { %1701 = vmatprep.mubr.msk.bf16.mxu0 %vm2049_vm0, %v2048_v0  ;;  %v2496_v55 = vpop.permute.xlu1 %754 }
 0x191   : > { %v2500_v57 = vpop.permute.xlu1 %764 }
 0x195   : > { %v2504_v59 = vpop.permute.xlu1 %774 }
 0x1a8   : > { %729 = vperm.xlu0 %1782, %v702_v7  }
 0x1ac   : > { %739 = vperm.xlu0 %1782, %v704_v8  }
 0x1b0   : > { %749 = vperm.xlu0 %1782, %v706_v9   ;;  %v2515_v9 = vld [vmem:[%s2721_s7] ss:$0 sm:$0xff] }
 0x1b1   : > { %vm803_vm2 = vcmp.eq.f32.partialorder %v720_v49, %v2515_v9  ;;  %vm804_vm4 = vcmp.eq.f32.partialorder %v725_v50, %v2515_v9  ;;  %vm806_vm5 = vcmp.eq.f32.partialorder %v735_v52, %v2515_v9  ;;  %vm808_vm7 = vcmp.eq.f32.partialorder %v2492_v54, %v2515_v9 }
 0x1b2   : > { %v1494_v41 = vsel %vm804_vm4, 1.0, %v2048_v0  ;;  %vm810_vm9 = vcmp.eq.f32.partialorder %v2496_v55, %v2515_v9  ;;  %vm812_vm14 = vcmp.eq.f32.partialorder %v2500_v57, %v2515_v9  ;;  %vm814_vm15 = vcmp.eq.f32.partialorder %v2504_v59, %v2515_v9 }
 0x1b4   : > { %759 = vperm.xlu0 %1782, %v708_v10  }
 0x1b8   : > { %769 = vperm.xlu0 %1782, %v710_v11  }
 0x1bc   : > { %779 = vperm.xlu0 %1782, %v712_v12  }
 0x1e9   : > { %v892_v13 = vpop.trf.xlu0 }
 0x1ea   : > { %1649 = vmatprep.mubr.msk.bf16.mxu1 %vm900_vm1, %v892_v13 }
 0x1ed   : > { %v893_v14 = vpop.trf.xlu0 }
 0x1ee   : > { %1650 = vmatmul.mubr.msk.bf16.vlgmr.msra.gmra.mrb[4].mxu1 %vm900_vm1, %v893_v14 }
 0x1f1   : > { %v894_v15 = vpop.trf.xlu0 }
 0x1f2   : > { %1653 = vmatprep.mubr.msk.bf16.mxu1 %vm900_vm1, %v894_v15  ;;  %v1493_v15 = vsel %vm803_vm2, 1.0, %v2048_v0 }
 0x1f5   : > { %v895_v16 = vpop.trf.xlu0 }
 0x1f6   : > { %1654 = vmatmul.mubr.msk.bf16.gmra.mrb[8].mxu1 %vm900_vm1, %v895_v16 }
 0x1f9   : > { %v896_v18 = vpop.trf.xlu0 }
 0x1fa   : > { %1657 = vmatprep.mubr.msk.bf16.mxu1 %vm900_vm1, %v896_v18 }
 0x1fd   : > { %v897_v19 = vpop.trf.xlu0 }
 0x1fe   : > { %1658 = vmatmul.mubr.msk.bf16.gmra.mrb[12].mxu1 %vm900_vm1, %v897_v19 }
 0x201   : > { %v898_v20 = vpop.trf.xlu0 }
 0x202   : > { %1661 = vmatprep.mubr.msk.bf16.mxu1 %vm900_vm1, %v898_v20 }
 0x205   : > { %v899_v21 = vpop.trf.xlu0 }
 0x206   : > { %1662 = vmatmul.mubr.msk.bf16.gmra.mrb[16].mxu1 %vm900_vm1, %v899_v21 }
 0x207   : > { %1681 = vmatprep.mubr.msk.bf16.mxu1 %vm2049_vm0, %v2048_v0 }
 0x227   : > { %v730_v51 = vpop.permute.xlu0 %729 }
 0x228   : > { %vm805_vm3 = vcmp.eq.f32.partialorder %v730_v51, %v2515_v9 }
 0x22b   : > { %v2490_v53 = vpop.permute.xlu0 %739 }
 0x22c   : > { %vm807_vm6 = vcmp.eq.f32.partialorder %v2490_v53, %v2515_v9 }
 0x22d   : > { %v1497_v52 = vsel %vm807_vm6, 1.0, %v2048_v0 }
 0x22f   : > { %v2494_v17 = vpop.permute.xlu0 %749 }
 0x230   : > { %vm809_vm8 = vcmp.eq.f32.partialorder %v2494_v17, %v2515_v9 }
 0x233   : > { %v2498_v56 = vpop.permute.xlu0 %759 }
 0x234   : > { %vm811_vm10 = vcmp.eq.f32.partialorder %v2498_v56, %v2515_v9 }
 0x237   : > { %v2502_v58 = vpop.permute.xlu0 %769 }
 0x238   : > { %vm813_vm11 = vcmp.eq.f32.partialorder %v2502_v58, %v2515_v9 }
 0x23b   : > { %v2506_v60 = vpop.permute.xlu0 %779 }
 0x23c   : > { %vm815_vm12 = vcmp.eq.f32.partialorder %v2506_v60, %v2515_v9 }
 0x23d   : > { %v1505_v58 = vsel %vm815_vm12, 1.0, %v2048_v0 }
 0x2c1   : > { %v2422_v22 = vpop.f32.mrb[4].mxu1 }
 0x2c2   : > { %1026 = vmax.xlane.f32.xlu1 %v2422_v22  ;;  %v2425_v23 = vpop.f32.mrb[5].mxu1 }
 0x2c3   : > { %1022 = vmax.xlane.f32.xlu0 %v2425_v23  ;;  %v2428_v24 = vpop.f32.mrb[6].mxu1 }
 0x2c4   : > { %v2430_v25 = vpop.f32.mrb[7].mxu1 }
 0x2c6   : > { %1028 = vmax.xlane.f32.xlu1 %v2428_v24 }
 0x2c9   : > { %v2433_v26 = vpop.f32.mrb[8].mxu1 }
 0x2ca   : > { %1024 = vmax.xlane.f32.xlu1 %v2430_v25  ;;  %v2436_v27 = vpop.f32.mrb[9].mxu1 }
 0x2cb   : > { %v2438_v28 = vpop.f32.mrb[10].mxu1 }
 0x2cc   : > { %1036 = vmax.xlane.f32.xlu0 %v2438_v28  ;;  %v2441_v29 = vpop.f32.mrb[11].mxu1 }
 0x2ce   : > { %1034 = vmax.xlane.f32.xlu1 %v2433_v26 }
 0x2d1   : > { %v2444_v30 = vpop.f32.mrb[12].mxu1 }
 0x2d2   : > { %1030 = vmax.xlane.f32.xlu1 %v2436_v27  ;;  %1042 = vmax.xlane.f32.xlu0 %v2444_v30  ;;  %v2448_v31 = vpop.f32.mrb[13].mxu1 }
 0x2d3   : > { %v2450_v32 = vpop.f32.mrb[14].mxu1 }
 0x2d4   : > { %v2452_v33 = vpop.f32.mrb[15].mxu1 }
 0x2d6   : > { %1032 = vmax.xlane.f32.xlu1 %v2441_v29  ;;  %1038 = vmax.xlane.f32.xlu0 %v2448_v31 }
 0x2d9   : > { %v2456_v34 = vpop.f32.mrb[16].mxu1 }
 0x2da   : > { %1050 = vmax.xlane.f32.xlu0 %v2456_v34  ;;  %v2459_v35 = vpop.f32.mrb[17].mxu1 }
 0x2db   : > { %v2461_v36 = vpop.f32.mrb[18].mxu1 }
 0x2dc   : > { %v2463_v37 = vpop.f32.mrb[19].mxu1 }
 0x2de   : > { %1046 = vmax.xlane.f32.xlu0 %v2459_v35 }
 0x2e7   : > { %784 = vperm.xlu1 %1781, %v713_v38  }
 0x2f4   : > { %789 = vperm.xlu0 %1782, %v714_v40  }
 0x30b   : > { %1044 = vmax.xlane.f32.xlu1 %v2450_v32 }
 0x30f   : > { %1040 = vmax.xlane.f32.xlu1 %v2452_v33 }
 0x313   : > { %1052 = vmax.xlane.f32.xlu1 %v2461_v36 }
 0x317   : > { %1048 = vmax.xlane.f32.xlu1 %v2463_v37 }
 0x328   : > { %794 = vperm.xlu1 %1781, %v715_v48  }
 0x34f   : > { %v1027_v61 = vpop.xlane.xlu1 %1026 }
 0x350   : > { %v1056_v62 = vsub.f32 %v2422_v22, %v1027_v61  ;;  %v1023_v63 = vpop.xlane.xlu0 %1022 }
 0x351   : > { %v1054_v1 = vsub.f32 %v2425_v23, %v1023_v63 }
 0x352   : > { %v1074_v2 = vmul.f32 1.442695, %v1056_v62 }
 0x353   : > { %v1070_v3 = vmul.f32 1.442695, %v1054_v1  ;;  %v1029_v4 = vpop.xlane.xlu1 %1028 }
 0x354   : > { %v1057_v5 = vsub.f32 %v2428_v24, %v1029_v4 }
 0x355   : > { %1819 = vpow2.f32 %v1070_v3 }
 0x356   : > { %1821 = vpow2.f32 %v1074_v2  ;;  %v1076_v6 = vmul.f32 1.442695, %v1057_v5  ;;  %v1499_v2 = vsel %vm809_vm8, 1.0, %v2048_v0  ;;  %v1500_v5 = vsel %vm810_vm9, 1.0, %v2048_v0 }
 0x357   : > { %v1025_v7 = vpop.xlane.xlu1 %1024 }
 0x358   : > { %v1055_v8 = vsub.f32 %v2430_v25, %v1025_v7  ;;  %1823 = vpow2.f32 %v1076_v6  ;;  %v1495_v25 = vsel %vm805_vm3, 1.0, %v2048_v0  ;;  %v1501_v6 = vsel %vm811_vm10, 1.0, %v2048_v0 }
 0x359   : > { %v1037_v11 = vpop.xlane.xlu0 %1036 }
 0x35a   : > { %v1072_v10 = vmul.f32 1.442695, %v1055_v8  ;;  %v1061_v22 = vsub.f32 %v2438_v28, %v1037_v11  ;;  %v1503_v8 = vsel %vm813_vm11, 1.0, %v2048_v0 }
 0x35b   : > { %v1035_v12 = vpop.xlane.xlu1 %1034 }
 0x35c   : > { %1825 = vpow2.f32 %v1072_v10  ;;  %v1060_v13 = vsub.f32 %v2433_v26, %v1035_v12  ;;  %v1084_v42 = vmul.f32 1.442695, %v1061_v22 }
 0x35e   : > { %v1082_v23 = vmul.f32 1.442695, %v1060_v13 }
 0x35f   : > { %v1820_v14 = vpop.eup %1819  ;;  %v1031_v16 = vpop.xlane.xlu1 %1030 }
 0x360   : > { %v1043_v18 = vpop.xlane.xlu0 %1042  ;;  %v1058_v19 = vsub.f32 %v2436_v27, %v1031_v16  ;;  %v2522_v20 = vmul.f32 %v1820_v14, %v1493_v15  ;;  %v1822_v21 = vpop.eup %1821 }
 0x361   : > { %v2531_v40 = vmul.f32 %v1822_v21, %v1495_v25  ;;  %v1064_v44 = vsub.f32 %v2444_v30, %v1043_v18 }
 0x362   : > { %v1078_v24 = vmul.f32 1.442695, %v1058_v19  ;;  %1118 = vadd.xlane.f32.xlu0 %v2522_v20  ;;  %v1824_v28 = vpop.eup %1823 }
 0x363   : > { %v1033_v26 = vpop.xlane.xlu1 %1032  ;;  %v1090_v49 = vmul.f32 1.442695, %v1064_v44 }
 0x364   : > { %v1039_v38 = vpop.xlane.xlu0 %1038  ;;  %1827 = vpow2.f32 %v1078_v24  ;;  %v1059_v27 = vsub.f32 %v2441_v29, %v1033_v26  ;;  %v1496_v29 = vsel %vm806_vm5, 1.0, %v2048_v0 }
 0x365   : > { %v1062_v39 = vsub.f32 %v2448_v31, %v1039_v38  ;;  %1829 = vpow2.f32 %v1082_v23  ;;  %v2541_v48 = vmul.f32 %v1824_v28, %v1496_v29 }
 0x366   : > { %v1826_v43 = vpop.eup %1825  ;;  %v1080_v45 = vmul.f32 1.442695, %v1059_v27  ;;  %1122 = vadd.xlane.f32.xlu0 %v2531_v40 }
 0x367   : > { %v1086_v46 = vmul.f32 1.442695, %v1062_v39  ;;  %v2539_v31 = vmul.f32 %v1826_v43, %v1494_v41  ;;  %v785_v60 = vpop.permute.xlu1 %784  ;;  %v1502_v41 = vsel %vm812_vm14, 1.0, %v2048_v0 }
 0x368   : > { %v1051_v47 = vpop.xlane.xlu0 %1050  ;;  %1831 = vpow2.f32 %v1080_v45  ;;  %vm816_vm0 = vcmp.eq.f32.partialorder %v785_v60, %v2515_v9 }
 0x369   : > { %1833 = vpow2.f32 %v1084_v42  ;;  %1120 = vadd.xlane.f32.xlu1 %v2539_v31  ;;  %v1068_v61 = vsub.f32 %v2456_v34, %v1051_v47  ;;  %v1506_v44 = vsel %vm816_vm0, 1.0, %v2048_v0  ;;  %v2620_v47 = vpop.f32.mrb[4].mxu0 }
 0x36a   : > { %1835 = vpow2.f32 %v1086_v46  ;;  %1124 = vadd.xlane.f32.xlu0 %v2541_v48 }
 0x36b   : > { %1837 = vpow2.f32 %v1090_v49  ;;  %v1098_v3 = vmul.f32 1.442695, %v1068_v61  ;;  %v1645_v49 = vpop.f32.mrb[5].mxu0 }
 0x36c   : > { %v1047_v30 = vpop.xlane.xlu0 %1046 }
 0x36d   : > { %v1066_v50 = vsub.f32 %v2459_v35, %v1047_v30  ;;  %v1498_v35 = vsel %vm808_vm7, 1.0, %v2048_v0  ;;  %v2622_v30 = vpop.f32.mrb[6].mxu0 }
 0x36e   : > { %v1828_v51 = vpop.eup %1827 }
 0x36f   : > { %v1094_v62 = vmul.f32 1.442695, %v1066_v50  ;;  %v2554_v63 = vmul.f32 %v1828_v51, %v1497_v52  ;;  %v1830_v1 = vpop.eup %1829  ;;  %v1182_v50 = vpack.c.bf16 %v2622_v30, %v2620_v47  ;;  %v1807_v51 = vld [vmem:[#allocation8] sm:$0xff]   ;;  %v1808_v52 = vld [vmem:[#allocation8 + $0x8] sm:$0xff]  }
 0x370   : > { %v2563_v54 = vmul.f32 %v1830_v1, %v1499_v2  ;;  %1686 = vmatpush3.bf16.msra.mxu0 %v1807_v51 }
 0x371   : > { %1126 = vadd.xlane.f32.xlu1 %v2554_v63  ;;  %1839 = vpow2.f32 %v1094_v62  ;;  %1687 = vmatprep.subr.bf16.mxu0 %v2048_v0  ;;  %v1809_v62 = vld [vmem:[#allocation8 + $0x10] sm:$0xff]  }
 0x372   : > { %v1832_v53 = vpop.eup %1831  ;;  %1841 = vpow2.f32 %v1098_v3  ;;  %v1811_v3 = vld [vmem:[#allocation8 + $0x20] sm:$0xff]  }
 0x373   : > { %v1834_v34 = vpop.eup %1833  ;;  %v2565_v17 = vmul.f32 %v1832_v53, %v1498_v35  ;;  %v790_v10 = vpop.permute.xlu0 %789  ;;  %v1810_v53 = vld [vmem:[#allocation8 + $0x18] sm:$0xff]  }
 0x374   : > { %v1836_v4 = vpop.eup %1835  ;;  %v2573_v55 = vmul.f32 %v1834_v34, %v1500_v5  ;;  %vm817_vm13 = vcmp.eq.f32.partialorder %v790_v10, %v2515_v9  ;;  %1688 = vmatpush3.bf16.msra.mxu0 %v1808_v52  ;;  %v1812_v34 = vld [vmem:[#allocation8 + $0x28] sm:$0xff]   ;;  %v1813_v5 = vld [vmem:[#allocation8 + $0x30] sm:$0xff]  }
 0x375   : > { %1130 = vadd.xlane.f32.xlu1 %v2563_v54  ;;  %1128 = vadd.xlane.f32.xlu0 %v2565_v17  ;;  %v2575_v56 = vmul.f32 %v1836_v4, %v1501_v6  ;;  %v1838_v7 = vpop.eup %1837  ;;  %v1507_v15 = vsel %vm817_vm13, 1.0, %v2048_v0 }
 0x376   : > { %v2582_v11 = vmul.f32 %v1838_v7, %v1503_v8  ;;  %1689 = vmatprep.subr.bf16.mxu0 %v2048_v0 }
 0x378   : > { %1690 = vmatpush3.bf16.msra.mxu0 %v1809_v62 }
 0x379   : > { %1132 = vadd.xlane.f32.xlu0 %v2573_v55  ;;  %1134 = vadd.xlane.f32.xlu1 %v2575_v56 }
 0x37a   : > { %1691 = vmatprep.subr.bf16.mxu0 %v2048_v0 }
 0x37b   : > { %v1840_v12 = vpop.eup %1839 }
 0x37c   : > { %v2587_v13 = vmul.f32 %v1840_v12, %v1505_v58  ;;  %v1842_v14 = vpop.eup %1841  ;;  %1692 = vmatpush3.bf16.msra.mxu0 %v1810_v53 }
 0x37d   : > { %1138 = vadd.xlane.f32.xlu1 %v2582_v11  ;;  %v2591_v16 = vmul.f32 %v1842_v14, %v1507_v15  ;;  %1693 = vmatprep.subr.bf16.mxu0 %v2048_v0 }
 0x380   : > { %1694 = vmatpush3.bf16.msra.mxu0 %v1811_v3 }
 0x381   : > { %1142 = vadd.xlane.f32.xlu1 %v2587_v13  ;;  %1695 = vmatprep.subr.bf16.mxu0 %v2048_v0 }
 0x384   : > { %1696 = vmatpush3.bf16.msra.mxu0 %v1812_v34 }
 0x385   : > { %1146 = vadd.xlane.f32.xlu1 %v2591_v16  ;;  %1697 = vmatprep.subr.bf16.mxu0 %v2048_v0 }
 0x388   : > { %1698 = vmatpush3.bf16.msra.mxu0 %v1813_v5 }
 0x389   : > { %1699 = vmatprep.subr.bf16.mxu0 %v2048_v0 }
 0x398   : > { %v1045_v18 = vpop.xlane.xlu1 %1044 }
 0x399   : > { %v1065_v19 = vsub.f32 %v2450_v32, %v1045_v18 }
 0x39b   : > { %v1092_v23 = vmul.f32 1.442695, %v1065_v19 }
 0x39c   : > { %v1041_v21 = vpop.xlane.xlu1 %1040 }
 0x39d   : > { %v1063_v22 = vsub.f32 %v2452_v33, %v1041_v21 }
 0x39f   : > { %v1088_v24 = vmul.f32 1.442695, %v1063_v22 }
 0x3a0   : > { %v1053_v25 = vpop.xlane.xlu1 %1052 }
 0x3a1   : > { %1843 = vpow2.f32 %v1088_v24  ;;  %v1069_v26 = vsub.f32 %v2461_v36, %v1053_v25  ;;  %v1504_v36 = vsel %vm814_vm15, 1.0, %v2048_v0 }
 0x3a2   : > { %1845 = vpow2.f32 %v1092_v23 }
 0x3a3   : > { %v1100_v39 = vmul.f32 1.442695, %v1069_v26 }
 0x3a4   : > { %v1049_v38 = vpop.xlane.xlu1 %1048 }
 0x3a5   : > { %v1067_v27 = vsub.f32 %v2463_v37, %v1049_v38 }
 0x3a7   : > { %v1096_v28 = vmul.f32 1.442695, %v1067_v27 }
 0x3a8   : > { %v795_v57 = vpop.permute.xlu1 %794 }
 0x3a9   : > { %1847 = vpow2.f32 %v1096_v28  ;;  %vm818_vm1 = vcmp.eq.f32.partialorder %v795_v57, %v2515_v9  ;;  %v1646_v9 = vpop.f32.mrb[7].mxu0 }
 0x3aa   : > { %1849 = vpow2.f32 %v1100_v39  ;;  %v1508_v46 = vsel %vm818_vm1, 1.0, %v2048_v0 }
 0x3ab   : > { %v1844_v32 = vpop.eup %1843 }
 0x3ac   : > { %v2603_v33 = vmul.f32 %v1844_v32, %v1502_v41  ;;  %v1846_v42 = vpop.eup %1845 }
 0x3ad   : > { %v2608_v37 = vmul.f32 %v1846_v42, %v1504_v36 }
 0x3ae   : > { %1136 = vadd.xlane.f32.xlu0 %v2603_v33 }
 0x3b2   : > { %1140 = vadd.xlane.f32.xlu0 %v2608_v37 }
 0x3b3   : > { %v1848_v43 = vpop.eup %1847 }
 0x3b4   : > { %v2613_v59 = vmul.f32 %v1848_v43, %v1506_v44  ;;  %v1850_v45 = vpop.eup %1849 }
 0x3b5   : > { %v2617_v29 = vmul.f32 %v1850_v45, %v1508_v46 }
 0x3b6   : > { %1144 = vadd.xlane.f32.xlu0 %v2613_v59 }
 0x3ba   : > { %1148 = vadd.xlane.f32.xlu0 %v2617_v29 }
 0x3ef   : > { %v1119_v61 = vpop.xlane.xlu0 %1118 }
 0x3f0   : > { %1851 = vrcp.f32 %v1119_v61 }
 0x3f3   : > { %v1123_v1 = vpop.xlane.xlu0 %1122 }
 0x3f6   : > { %v1121_v35 = vpop.xlane.xlu1 %1120 }
 0x3f7   : > { %1853 = vrcp.f32 %v1121_v35  ;;  %v1125_v2 = vpop.xlane.xlu0 %1124 }
 0x3f8   : > { %1855 = vrcp.f32 %v1125_v2 }
 0x3f9   : > { %1857 = vrcp.f32 %v1123_v1 }
 0x3fa   : > { %v1852_v4 = vpop.eup %1851 }
 0x3fb   : > { %v1166_v10 = vmul.f32 %v1852_v4, %v2522_v20 }
 0x3fe   : > { %v1127_v7 = vpop.xlane.xlu1 %1126 }
 0x401   : > { %v1854_v6 = vpop.eup %1853 }
 0x402   : > { %v1129_v8 = vpop.xlane.xlu0 %1128  ;;  %v1167_v12 = vmul.f32 %v1854_v6, %v2539_v31  ;;  %v1856_v14 = vpop.eup %1855 }
 0x403   : > { %1859 = vrcp.f32 %v1129_v8  ;;  %v1858_v15 = vpop.eup %1857  ;;  %v1169_v18 = vmul.f32 %v1856_v14, %v2541_v48  ;;  %v1131_v19 = vpop.xlane.xlu1 %1130 }
 0x404   : > { %v1183_v58 = vpack.c.bf16 %v1167_v12, %v1166_v10  ;;  %1861 = vrcp.f32 %v1127_v7  ;;  %v1168_v21 = vmul.f32 %v1858_v15, %v2531_v40 }
 0x406   : > { %1666 = vmatpush3.bf16.xpose.msra.mxu1 %v1183_v58  ;;  %v1133_v60 = vpop.xlane.xlu0 %1132  ;;  %v1184_v20 = vpack.c.bf16 %v1169_v18, %v1168_v21 }
 0x407   : > { %1667 = vmatprep.subr.bf16.mxu1 %v2048_v0  ;;  %1863 = vrcp.f32 %v1133_v60  ;;  %v1135_v39 = vpop.xlane.xlu1 %1134 }
 0x408   : > { %1865 = vrcp.f32 %v1131_v19 }
 0x409   : > { %1867 = vrcp.f32 %v1135_v39 }
 0x40d   : > { %v1860_v31 = vpop.eup %1859 }
 0x40e   : > { %1668 = vmatpush3.bf16.xpose.msra.mxu1 %v1184_v20  ;;  %v1862_v22 = vpop.eup %1861  ;;  %v1171_v23 = vmul.f32 %v1860_v31, %v2565_v17  ;;  %v1139_v17 = vpop.xlane.xlu1 %1138 }
 0x40f   : > { %1669 = vmatprep.subr.bf16.mxu1 %v2048_v0  ;;  %v1170_v24 = vmul.f32 %v1862_v22, %v2554_v63 }
 0x411   : > { %v1185_v25 = vpack.c.bf16 %v1171_v23, %v1170_v24  ;;  %v1864_v26 = vpop.eup %1863 }
 0x412   : > { %v1866_v38 = vpop.eup %1865  ;;  %v1173_v40 = vmul.f32 %v1864_v26, %v2573_v55  ;;  %v1143_v36 = vpop.xlane.xlu1 %1142 }
 0x413   : > { %v1172_v48 = vmul.f32 %v1866_v38, %v2563_v54  ;;  %v1868_v32 = vpop.eup %1867 }
 0x414   : > { %v1174_v55 = vmul.f32 %v1868_v32, %v2575_v56 }
 0x415   : > { %v1186_v27 = vpack.c.bf16 %v1173_v40, %v1172_v48 }
 0x416   : > { %1670 = vmatpush3.bf16.xpose.msra.mxu1 %v1185_v25  ;;  %v1147_v49 = vpop.xlane.xlu1 %1146 }
 0x417   : > { %1671 = vmatprep.subr.bf16.mxu1 %v2048_v0 }
 0x41e   : > { %1672 = vmatpush3.bf16.xpose.msra.mxu1 %v1186_v27 }
 0x41f   : > { %1673 = vmatprep.subr.bf16.mxu1 %v2048_v0 }
 0x43b   : > { %v1137_v28 = vpop.xlane.xlu0 %1136 }
 0x43c   : > { %1869 = vrcp.f32 %v1137_v28 }
 0x43f   : > { %v1141_v63 = vpop.xlane.xlu0 %1140 }
 0x440   : > { %1871 = vrcp.f32 %v1141_v63 }
 0x441   : > { %1873 = vrcp.f32 %v1139_v17 }
 0x443   : > { %v1145_v41 = vpop.xlane.xlu0 %1144 }
 0x444   : > { %1875 = vrcp.f32 %v1145_v41 }
 0x445   : > { %1877 = vrcp.f32 %v1143_v36 }
 0x446   : > { %v1870_v42 = vpop.eup %1869 }
 0x447   : > { %v1175_v54 = vmul.f32 %v1870_v42, %v2603_v33  ;;  %v1149_v45 = vpop.xlane.xlu0 %1148 }
 0x448   : > { %1879 = vrcp.f32 %v1149_v45 }
 0x449   : > { %v1187_v57 = vpack.c.bf16 %v1175_v54, %v1174_v55  ;;  %1881 = vrcp.f32 %v1147_v49 }
 0x44a   : > { %v1872_v43 = vpop.eup %1871 }
 0x44b   : > { %1674 = vmatpush3.bf16.xpose.msra.mxu1 %v1187_v57  ;;  %v1874_v44 = vpop.eup %1873  ;;  %v1177_v46 = vmul.f32 %v1872_v43, %v2608_v37 }
 0x44c   : > { %1675 = vmatprep.subr.bf16.mxu1 %v2048_v0  ;;  %v1176_v9 = vmul.f32 %v1874_v44, %v2582_v11 }
 0x44e   : > { %v1188_v51 = vpack.c.bf16 %v1177_v46, %v1176_v9  ;;  %v1876_v52 = vpop.eup %1875 }
 0x44f   : > { %v1878_v56 = vpop.eup %1877  ;;  %v1179_v33 = vmul.f32 %v1876_v52, %v2613_v59  ;;  %v1814_v59 = vld [vmem:[#allocation8 + $0x38] sm:$0xff]  }
 0x450   : > { %v1178_v61 = vmul.f32 %v1878_v56, %v2587_v13  ;;  %1700 = vmatpush3.bf16.msra.mxu0 %v1814_v59 }
 0x452   : > { %v1189_v62 = vpack.c.bf16 %v1179_v33, %v1178_v61  ;;  %v1880_v1 = vpop.eup %1879 }
 0x453   : > { %1676 = vmatpush3.bf16.xpose.msra.mxu1 %v1188_v51  ;;  %v1882_v53 = vpop.eup %1881  ;;  %v1181_v11 = vmul.f32 %v1880_v1, %v2617_v29 }
 0x454   : > { %1677 = vmatprep.subr.bf16.mxu1 %v2048_v0  ;;  %v1180_v37 = vmul.f32 %v1882_v53, %v2591_v16 }
 0x456   : > { %v1190_v35 = vpack.c.bf16 %v1181_v11, %v1180_v37 }
 0x45b   : > { %1678 = vmatpush3.bf16.xpose.msra.mxu1 %v1189_v62 }
 0x45c   : > { %1679 = vmatprep.subr.bf16.mxu1 %v2048_v0  ;;  %v1517_v0 = vld [vmem:[%s2719_s5] ss:$0 sm:$0xff] }
 0x463   : > { %1680 = vmatpush3.bf16.xpose.msra.mxu1 %v1190_v35 }
 0x46a   : > { %1682 = vmatmul.mubr.bf16.vlgmr.msra.gmra.mrb[20].mxu1 %v1182_v50 }
 0x53d   : > { %v1225_v13 = vpop.f32.mrb[20].mxu1 }
 0x53e   : > { %v1683_v2 = vpop.f32.mrb[21].mxu1 }
 0x53f   : > { %v1228_v3 = vpop.f32.mrb[22].mxu1 }
 0x540   : > { %v1232_v34 = vpack.c.bf16 %v1228_v3, %v1225_v13  ;;  %v1684_v4 = vpop.f32.mrb[23].mxu1 }
 0x542   : > { %1702 = vmatmul.mubr.bf16.vlgmr.msra.gmra.mrb[8].mxu0 %v1232_v34 }
 0x615   : > { %v1340_v16 = vpop.f32.mrb[8].mxu0 }
 0x616   : > { %v1341_v29 = vadd.f32 %v1517_v0, %v1340_v16  ;;  %v1703_v47 = vpop.f32.mrb[9].mxu0 }
 0x617   : > { %v1343_v30 = vpop.f32.mrb[10].mxu0 }
 0x618   : > { %1347 = vst [vmem:[%s379_s21] sm:$0xff] %v1341_v29  ;;  %v1344_v50 = vadd.f32 %v1517_v0, %v1343_v30  ;;  %v1704_v5 = vpop.f32.mrb[11].mxu0 }
 0x61a   : > { %1348 = vst [vmem:[%s379_s21 + $0x8] sm:$0xff] %v1344_v50 }
 0x61b   : > { %1982 = shalt.err (!%p1979_p2)
}
 0x61c   : > { %s1983_s23 = scalar_lea.hbm %s2670_s15, 256  ;;  %s1987_s18 = scalar_lea.hbm %s2723_s9, 512 }
 0x61d   : > { %p1984_p13 = scmp.ne.s32.totalorder %s2670_s15, %s1983_s23  ;;  %p1988_p4 = scmp.lt.u32.totalorder %s2670_s15, %s2723_s9 }
 0x61e   : > { %p1989_p5 = scmp.lt.u32.totalorder %s1987_s18, %s1983_s23  ;;  %p1991_p11 = scmp.lt.u32.totalorder %s1983_s23, %s2670_s15 }
 0x61f   : > { %p1985_p6 = pnand %p1984_p13, %p2739_p0 }
 0x620   : > { %p1990_p8 = por %p1989_p5, %p1988_p4 }
 0x621   : > { %p1986_p10 = pneg %p1985_p6 }
 0x622   : > { %p1992_p1 = por %p1991_p11, %p1990_p8 }
 0x624   : > { %p1993_p3 = pnand %p1992_p1, %p1986_p10 }
 0x626   : > { %1996 = shalt.err (!%p1993_p3)
}
 0x627   : > { %s2052_s13 = smov 128   ;;  %s2053_s17 = smov 8  }
 0x628   : > { %1715 = dma.vmem_to_hbm [thread:$0]  (%p2739_p0), %s2665_s25, 256, %s2670_s15, %s1350_s28, %s2052_s13, %s2052_s13, %s2053_s17  }
 0x629 PF: > { %s2740_s14 = sld [smem:[#allocation13_spill]]  ;;  %s1378_s16 = sand.u32 1, %s2027_s30  }
 0x62a   : > { %p2742_p9 = scmp.ge.s32.totalorder %s2039_s12, 2  ;;  %s1379_s23 = scalar_lea.sflag [#allocation5], %s1378_s16 }
 0x62f   : > { %p2741_p7 = scmp.ne.s32.totalorder %s2740_s14, 0 }
 0x631   : > { %p1729_p12 = pnand %p2742_p9, %p2741_p7 }
 0x633   : > { %2022 = dma.done.wait (!%p1729_p12), %s1379_s23, 256  }
 0x634   : > { %2024 = vsyncadd (!%p1729_p12), %s1379_s23, 4294967040  ;;  %p23_p2 = scmp.ge.s32.totalorder %s2214_s24, 4   ;;  %s2743_s30 = smov %s2031_s10 }
 0x635   : > { %s2744_s10 = smov %s2035_s11  ;;  %s2745_s11 = smov %s2230_s27 }
 0x636   : > { %s2746_s12 = smov %s2214_s24  ;;  %25 = sbr.rel (!%p23_p2) target bundleno = 6 (0x6), region = 109 }
 0x63d   :  { %1384 = vsyncpa [#allocation4], 1 }
 0x63e   :  { %1386 = vsyncpa [#allocation4 + $0x1], 1 }
 0x63f   :  { %1387 = vsyncpa [#allocation7], 1 }
 0x640   :  { %1388 = vsyncpa [#allocation5], 1 }
 0x641   :  { %1390 = vsyncpa [#allocation5 + $0x1], 1 }

// kernel: tpu_custom_call.1
= control target key start
LH: loop header
LB: loop body
LE: loop exit
PB: predicated region body
PF: predicated region fallthrough
CT: control target
= control target key end

     0   :  { %14 = vsyncpa [#allocation4], 0  ;;  %s2714_s0 = inlined_call_operand.hbm [shape: f32[2,16,128], index: 0, kind: input, shape index: {}]   ;;  %s2715_s1 = inlined_call_operand.vmem [shape: bf16[128,128], index: 1, kind: input, shape index: {}]   ;;  %s2716_s2 = inlined_call_operand.vmem [shape: bf16[128,128], index: 2, kind: input, shape index: {}]   ;;  %s2717_s3 = inlined_call_operand.hbm [shape: bf16[128,128], index: 3, kind: input, shape index: {}]   ;;  %s2718_s4 = inlined_call_operand.hbm [shape: bf16[128,128], index: 4, kind: input, shape index: {}]   ;;  %s2719_s5 = inlined_call_operand.vmem [shape: f32[1,128], index: 5, kind: input, shape index: {}]   ;;  %s2720_s6 = inlined_call_operand.vmem [shape: f32[1,128], index: 6, kind: input, shape index: {}]   ;;  %s2721_s7 = inlined_call_operand.vmem [shape: f32[1,128], index: 7, kind: input, shape index: {}]   ;;  %s2722_s8 = inlined_call_operand.vmem [shape: f32[128,1], index: 8, kind: input, shape index: {}]   ;;  %s2723_s9 = inlined_call_operand.hbm [shape: f32[2,16,128], index: 9, kind: output, shape index: {}]  }
   0x1   :  { %16 = vsyncpa [#allocation4 + $0x1], 0 }
   0x2   :  { %17 = vsyncpa [#allocation7], 0 }
   0x3   :  { %18 = vsyncpa [#allocation5], 0 }
   0x4   :  { %20 = vsyncpa [#allocation5 + $0x1], 0  ;;  %s2104_s30 = smov 0   ;;  %s2106_s10 = smov 0  }
   0x5   :  { %s2108_s11 = smov 0   ;;  %s2110_s12 = smov 0  }
   0x6 LB: > { %s2125_s13 = sadd.s32 4294967295, %s2039_s12   ;;  %s1455_s14 = sadd.s32 4294967294, %s2039_s12   ;;  %s2039_s12 = sphi %s2110_s12, %s2746_s12   ;;  %s2035_s11 = sphi %s2108_s11, %s2745_s11   ;;  %s2031_s10 = sphi %s2106_s10, %s2744_s10   ;;  %s2027_s30 = sphi %s2104_s30, %s2743_s30  }
   0x7   : > { %p46_p0 = scmp.ne.s32.totalorder %s2031_s10, %s2027_s30  ;;  %p2724_p1 = scmp.eq.s32.totalorder %s2125_s13, 0 }
   0x8   : > { %p244_p3 = scmp.eq.s32.totalorder %s1455_s14, 1  ;;  %p1456_p5 = scmp.ge.s32.totalorder %s2039_s12, 1 }
   0x9   : > { %p2134_p4 = por %p2724_p1, %p46_p0  ;;  %p251_p7 = scmp.lt.s32.totalorder %s2039_s12, 3 }
   0xa   : > { %p2139_p6 = por %p244_p3, %p46_p0  ;;  %s2041_s18 = smov [#allocation6]  }
   0xb   : > { %s2728_s15 = scalar_select %p2134_p4, 1, 0 }
   0xc   : > { %s2729_s16 = scalar_select %p2139_p6, 1, 0 }
   0xd   : > { %p2144_p8 = pnand %p1456_p5, %p251_p7  ;;  %s269_s19 = sshll.u32 %s2041_s18, 4  ;;  %s2148_s19 = int_to_ptr.vmem [resolvable:$true] %s269_s19 }
   0xe   : > { %2730 = sst [smem:[#allocation13_spill]] %s2729_s16  ;;  %s2042_s21 = smov [#allocation8]  }
   0xf   : > { %p1717_p9 = pneg %p2144_p8  ;;  %s282_s22 = sshll.u32 %s2042_s21, 4  ;;  %s2159_s22 = int_to_ptr.vmem [resolvable:$true] %s282_s22 }
  0x10   : > { %s1883_s25 = scalar_lea.hbm %s2717_s3, 1024 }
  0x11   : > { %p2155_p11 = pnand %p1717_p9, %p2724_p1  ;;  %p1884_p12 = scmp.ne.s32.totalorder %s2717_s3, %s1883_s25 }
  0x12   : > { %p1890_p5 = scmp.lt.u32.totalorder %s1883_s25, %s2717_s3 }
  0x13   : > { %p1885_p13 = pneg %p2155_p11 }
  0x15   : > { %p1886_p0 = pnand %p1885_p13, %p1884_p12 }
  0x17   : > { %p1887_p3 = pneg %p1886_p0 }
  0x19   : > { %p1892_p7 = pnand %p1890_p5, %p1887_p3 }
  0x1b   : > { %1895 = shalt.err (!%p1892_p7)
}
  0x1c   : > { %s1896_s14 = scalar_lea.vmem %s2148_s19, 1024  ;;  %p1904_p2 = scmp.lt.s32.totalorder %s2148_s19, %s2148_s19 }
  0x1d   : > { %p1897_p9 = scmp.ne.s32.totalorder %s2148_s19, %s1896_s14  ;;  %p1905_p12 = scmp.lt.s32.totalorder %s1896_s14, %s1896_s14 }
  0x1f   : > { %p1899_p10 = pnand %p1897_p9, %p1885_p13  ;;  %p1906_p0 = por %p1905_p12, %p1904_p2 }
  0x21   : > { %p1900_p1 = pneg %p1899_p10 }
  0x23   : > { %p1907_p6 = pnand %p1906_p0, %p1900_p1 }
  0x25   : > { %1910 = shalt.err (!%p1907_p6)
}
  0x26   : > { %s2043_s18 = smov 64   ;;  %s2044_s21 = smov 4  }
  0x27   : > { %1720 = dma.hbm_to_vmem [thread:$0]  (!%p2155_p11), %s2717_s3, 1024, %s2148_s19, [#allocation7], %s2043_s18, %s2043_s18, %s2044_s21  }
  0x28   : > { %s1911_s27 = scalar_lea.hbm %s2718_s4, 1024 }
  0x29   : > { %p1912_p2 = scmp.ne.s32.totalorder %s2718_s4, %s1911_s27  ;;  %p1918_p10 = scmp.lt.u32.totalorder %s1911_s27, %s2718_s4 }
  0x2b   : > { %p1914_p1 = pnand %p1912_p2, %p1885_p13 }
  0x2d   : > { %p1915_p6 = pneg %p1914_p1 }
  0x2f   : > { %p1920_p3 = pnand %p1918_p10, %p1915_p6 }
  0x31   : > { %1923 = shalt.err (!%p1920_p3)
}
  0x32   : > { %s1924_s19 = scalar_lea.vmem %s2159_s22, 1024  ;;  %p1932_p12 = scmp.lt.s32.totalorder %s2159_s22, %s2159_s22 }
  0x33   : > { %p1925_p5 = scmp.ne.s32.totalorder %s2159_s22, %s1924_s19  ;;  %p1933_p0 = scmp.lt.s32.totalorder %s1924_s19, %s1924_s19 }
  0x35   : > { %p1927_p7 = pnand %p1925_p5, %p1885_p13  ;;  %p1934_p2 = por %p1933_p0, %p1932_p12 }
  0x37   : > { %p1928_p9 = pneg %p1927_p7 }
  0x39   : > { %p1935_p1 = pnand %p1934_p2, %p1928_p9 }
  0x3b   : > { %1938 = shalt.err (!%p1935_p1)
}
  0x3c   : > { %1723 = dma.hbm_to_vmem [thread:$0]  (!%p2155_p11), %s2718_s4, 1024, %s2159_s22, [#allocation7], %s2043_s18, %s2043_s18, %s2044_s21  }
  0x3d   : > { %s2214_s24 = sadd.s32 1, %s2039_s12   ;;  %s33_s20 = sadd.s32 1, %s2035_s11 }
  0x3e   : > { %s30_s25 = ssub.s32 %s2039_s12, %s2214_s24  ;;  %p40_p13 = scmp.ne.s32.totalorder %s2035_s11, %s2031_s10 }
  0x3f   : > { %p31_p6 = scmp.eq.s32.totalorder %s30_s25, 0  ;;  %p41_p10 = scmp.eq.s32.totalorder %s2039_s12, 0 }
  0x40   : > { %p2733_p3 = scmp.eq.s32.totalorder %s2125_s13, 1  ;;  %p1734_p7 = scmp.lt.s32.totalorder %s2039_s12, 2 }
  0x41   : > { %s2230_s27 = scalar_select %p31_p6, %s2035_s11, %s33_s20  }
  0x42   : > { %p2224_p5 = por %p2733_p3, %p40_p13  ;;  %p42_p9 = por %p41_p10, %p40_p13 }
  0x43   : > { %s308_s28 = sand.u32 1, %s2035_s11   ;;  %s1531_s22 = sshll.u32 %s2039_s12, 8 }
  0x44   : > { %s2734_s26 = scalar_select %p2224_p5, 1, 0 }
  0x45   : > { %s1460_s29 = sshll.u32 %s308_s28, 4  ;;  %s2237_s14 = scalar_lea.hbm %s2714_s0, %s1531_s22 }
  0x46   : > { %s312_s19 = scalar_lea.vmem [#allocation3], %s1460_s29  ;;  %p2241_p11 = pnand %p1734_p7, %p42_p9 }
  0x47   : > { %s319_s16 = sshll.u32 %s312_s19, 4  ;;  %s2245_s20 = scalar_lea.sflag [#allocation4], %s308_s28  ;;  %s2239_s16 = int_to_ptr.vmem [resolvable:$true] %s319_s16 }
  0x48   : > { %s1939_s25 = scalar_lea.hbm %s2237_s14, 256  ;;  %p1941_p0 = pneg %p2241_p11 }
  0x49   : > { %p1940_p12 = scmp.ne.s32.totalorder %s2237_s14, %s1939_s25  ;;  %s1944_s18 = scalar_lea.hbm %s2714_s0, 512 }
  0x4a   : > { %p1945_p13 = scmp.lt.u32.totalorder %s2237_s14, %s2714_s0  ;;  %p1946_p6 = scmp.lt.u32.totalorder %s1944_s18, %s1939_s25 }
  0x4b   : > { %p1942_p2 = pnand %p1941_p0, %p1940_p12  ;;  %p1948_p3 = scmp.lt.u32.totalorder %s1939_s25, %s2237_s14 }
  0x4c   : > { %p1947_p10 = por %p1946_p6, %p1945_p13 }
  0x4d   : > { %p1943_p1 = pneg %p1942_p2 }
  0x4e   : > { %p1949_p7 = por %p1948_p3, %p1947_p10 }
  0x50   : > { %p1950_p9 = pnand %p1949_p7, %p1943_p1 }
  0x52   : > { %1953 = shalt.err (!%p1950_p9)
}
  0x53   : > { %s1954_s28 = scalar_lea.vmem %s2239_s16, 256  ;;  %s2045_s29 = smov [#allocation3]  }
  0x54   : > { %p1955_p12 = scmp.ne.s32.totalorder %s2239_s16, %s1954_s28  ;;  %s1959_s22 = sshll.u32 %s2045_s29, 4  ;;  %s1960_s22 = int_to_ptr.vmem [resolvable:$false] %s1959_s22 }
  0x55   : > { %s1961_s21 = scalar_lea.vmem %s1960_s22, 512  ;;  %p1962_p4 = scmp.lt.s32.totalorder %s2239_s16, %s1960_s22 }
  0x56   : > { %p1957_p2 = pnand %p1955_p12, %p1941_p0  ;;  %p1963_p13 = scmp.lt.s32.totalorder %s1961_s21, %s1954_s28 }
  0x58   : > { %p1958_p5 = pneg %p1957_p2  ;;  %p1964_p6 = por %p1963_p13, %p1962_p4 }
  0x5a   : > { %p1965_p10 = pnand %p1964_p6, %p1958_p5 }
  0x5c   : > { %1968 = shalt.err (!%p1965_p10)
}
  0x5d   : > { %s2046_s25 = smov 128   ;;  %s2047_s18 = smov 8  }
  0x5e   : > { %1727 = dma.hbm_to_vmem [thread:$0]  (!%p2241_p11), %s2237_s14, 256, %s2239_s16, %s2245_s20, %s2046_s25, %s2046_s25, %s2047_s18  }
  0x5f   : > { %331 = sbr.rel (%p2144_p8) target bundleno = 1577 (0x629), region = 56  ;;  %s2276_s19 = sand.u32 (!%p2144_p8), 1, %s2031_s10  }
  0x60   : > { %s1464_s28 = sshll.u32 (!%p2144_p8), %s2276_s19, 4  ;;  %s334_s29 = scalar_lea.sflag (!%p2144_p8), [#allocation4], %s2276_s19 }
  0x61   : > { %s2282_s22 = scalar_lea.vmem (!%p2144_p8), [#allocation3], %s1464_s28  ;;  %p2736_p4 = scmp.ne.s32.totalorder (!%p2144_p8), %s2728_s15, 0 }
  0x66   : > { %2014 = dma.done.wait (%p2736_p4), %s334_s29, 256  }
  0x67   : > { %2016 = vsyncadd (%p2736_p4), %s334_s29, 4294967040  ;;  %p2737_p5 = scmp.eq.s32.totalorder %s2125_s13, 0 }
  0x69   : > { %2018 = dma.done.wait (%p2737_p5), [#allocation7], 2048   ;;  %p2738_p8 = pmov %p2737_p5 }
  0x6a   : > { %v2048_v0 = vmov 0.0   ;;  %vm2049_vm0 = vmmov 0   ;;  %v1783_v1 = vld [vmem:[%s2715_s1] sm:$0xff]   ;;  %v1784_v2 = vld [vmem:[%s2715_s1 + $0x8] sm:$0xff]   ;;  %v1785_v3 = vld [vmem:[%s2715_s1 + $0x10] sm:$0xff]   ;;  %v877_v49 = vlaneseq  ;;  %v2050_v58 = vmov 0  }
  0x6b   : > { %2020 = vsyncadd (%p2738_p8), [#allocation7], 4294965248  ;;  %1587 = vmatprep.subr.bf16.mxu0 %v2048_v0  ;;  %1603 = vmatprep.mubr.msk.bf16.mxu0 %vm2049_vm0, %v2048_v0  ;;  %v1791_v4 = vld [vmem:[%s2716_s2] sm:$0xff]   ;;  %v1786_v5 = vld [vmem:[%s2715_s1 + $0x18] sm:$0xff]   ;;  %vm900_vm1 = vcmask 130048   ;;  %s379_s21 = scalar_lea.vmem [#allocation9], %s1464_s28 }
  0x6c   : > { %1607 = vmatprep.subr.bf16.mxu1 %v2048_v0  ;;  %1623 = vmatprep.mubr.msk.bf16.mxu1 %vm2049_vm0, %v2048_v0  ;;  %v1792_v6 = vld [vmem:[%s2716_s2 + $0x8] sm:$0xff]   ;;  %v1787_v7 = vld [vmem:[%s2715_s1 + $0x20] sm:$0xff]   ;;  %v1793_v8 = vld [vmem:[%s2716_s2 + $0x10] sm:$0xff]   ;;  %v878_v53 = vshrl.u32 %v877_v49, 7  ;;  %s1363_s25 = sshll.u32 %s379_s21, 4  ;;  %s1532_s18 = sshll.u32 %s2125_s13, 8  ;;  %s2665_s25 = int_to_ptr.vmem [resolvable:$true] %s1363_s25 }
  0x6d   : > { %1588 = vmatpush3.bf16.msra.mxu0 %v1783_v1  ;;  %1608 = vmatpush3.bf16.msra.mxu1 %v1791_v4  ;;  %v1788_v9 = vld [vmem:[%s2715_s1 + $0x28] sm:$0xff]   ;;  %v1794_v10 = vld [vmem:[%s2716_s2 + $0x18] sm:$0xff]   ;;  %v1789_v11 = vld [vmem:[%s2715_s1 + $0x30] sm:$0xff]   ;;  %s2670_s15 = scalar_lea.hbm %s2723_s9, %s1532_s18  ;;  %s1350_s28 = scalar_lea.sflag [#allocation5], %s2276_s19 }
  0x6e   : > { %1589 = vmatprep.subr.bf16.mxu0 %v2048_v0  ;;  %1609 = vmatprep.subr.bf16.mxu1 %v2048_v0  ;;  %v1795_v12 = vld [vmem:[%s2716_s2 + $0x20] sm:$0xff]   ;;  %v1790_v13 = vld [vmem:[%s2715_s1 + $0x38] sm:$0xff]   ;;  %v1796_v16 = vld [vmem:[%s2716_s2 + $0x28] sm:$0xff]   ;;  %v879_v55 = vsub.s32 0, %v878_v53  ;;  %s1969_s13 = scalar_lea.vmem %s2665_s25, 256  ;;  %p2739_p0 = scmp.ne.s32.totalorder %s2734_s26, 0 }
  0x6f   : > { %v381_v14 = vld [vmem:[%s2282_s22] sm:$0xff]  ;;  %v382_v15 = vld [vmem:[%s2282_s22 + $0x8] sm:$0xff]  ;;  %1781 = vset.pattern.permute.xlu1 %v2050_v58  ;;  %p1970_p11 = scmp.ne.s32.totalorder %s2665_s25, %s1969_s13  ;;  %s2051_s17 = smov [#allocation9]  }
  0x70   : > { %v2354_v17 = vpack.c.bf16 %v382_v15, %v381_v14  ;;  %v1797_v18 = vld [vmem:[%s2716_s2 + $0x30] sm:$0xff]   ;;  %v1798_v19 = vld [vmem:[%s2716_s2 + $0x38] sm:$0xff]   ;;  %v699_v54 = vld [vmem:[%s2720_s6] sm:$0x1]  ;;  %s1973_s14 = sshll.u32 %s2051_s17, 4  ;;  %s1974_s14 = int_to_ptr.vmem [resolvable:$false] %s1973_s14 }
  0x71   : > { %1590 = vmatpush3.bf16.msra.mxu0 %v1784_v2  ;;  %1610 = vmatpush3.bf16.msra.mxu1 %v1792_v6  ;;  %v700_v56 = vld [vmem:[%s2722_s8] sm:$0xff]  ;;  %v701_v60 = vld [vmem:[%s2722_s8 + $0x8] sm:$0xff]  ;;  %v703_v1 = vld [vmem:[%s2722_s8 + $0x18] sm:$0xff]  ;;  %p1971_p1 = pnand %p1970_p11, %p2739_p0  ;;  %s1975_s16 = scalar_lea.vmem %s1974_s14, 512 }
  0x72   : > { %1591 = vmatprep.subr.bf16.mxu0 %v2048_v0  ;;  %1611 = vmatprep.subr.bf16.mxu1 %v2048_v0  ;;  %v707_v4 = vld [vmem:[%s2722_s8 + $0x38] sm:$0xff]  ;;  %p1976_p7 = scmp.lt.s32.totalorder %s2665_s25, %s1974_s14  ;;  %p1977_p9 = scmp.lt.s32.totalorder %s1975_s16, %s1969_s13 }
  0x73   : > { %719 = vperm.xlu1 %1781, %v700_v56   ;;  %v711_v6 = vld [vmem:[%s2722_s8 + $0x58] sm:$0xff]  ;;  %p1972_p3 = pneg %p1971_p1 }
  0x74   : > { %p1978_p12 = por %p1977_p9, %p1976_p7 }
  0x75   : > { %1592 = vmatpush3.bf16.msra.mxu0 %v1785_v3  ;;  %1612 = vmatpush3.bf16.msra.mxu1 %v1793_v8  ;;  %v705_v3 = vld [vmem:[%s2722_s8 + $0x28] sm:$0xff]  ;;  %v704_v8 = vld [vmem:[%s2722_s8 + $0x20] sm:$0xff] }
  0x76   : > { %1593 = vmatprep.subr.bf16.mxu0 %v2048_v0  ;;  %1613 = vmatprep.subr.bf16.mxu1 %v2048_v0  ;;  %p1979_p2 = pnand %p1978_p12, %p1972_p3 }
  0x77   : > { %724 = vperm.xlu1 %1781, %v701_v60  }
  0x79   : > { %1594 = vmatpush3.bf16.msra.mxu0 %v1786_v5  ;;  %1614 = vmatpush3.bf16.msra.mxu1 %v1794_v10  ;;  %v709_v5 = vld [vmem:[%s2722_s8 + $0x48] sm:$0xff]  ;;  %v708_v10 = vld [vmem:[%s2722_s8 + $0x40] sm:$0xff] }
  0x7a   : > { %1595 = vmatprep.subr.bf16.mxu0 %v2048_v0  ;;  %1615 = vmatprep.subr.bf16.mxu1 %v2048_v0 }
  0x7b   : > { %734 = vperm.xlu1 %1781, %v703_v1  }
  0x7d   : > { %1596 = vmatpush3.bf16.msra.mxu0 %v1787_v7  ;;  %1616 = vmatpush3.bf16.msra.mxu1 %v1795_v12  ;;  %v702_v7 = vld [vmem:[%s2722_s8 + $0x10] sm:$0xff]  ;;  %v712_v12 = vld [vmem:[%s2722_s8 + $0x60] sm:$0xff] }
  0x7e   : > { %1597 = vmatprep.subr.bf16.mxu0 %v2048_v0  ;;  %1617 = vmatprep.subr.bf16.mxu1 %v2048_v0 }
  0x7f   : > { %744 = vperm.xlu1 %1781, %v705_v3  }
  0x81   : > { %1598 = vmatpush3.bf16.msra.mxu0 %v1788_v9  ;;  %1618 = vmatpush3.bf16.msra.mxu1 %v1796_v16  ;;  %v706_v9 = vld [vmem:[%s2722_s8 + $0x30] sm:$0xff] }
  0x82   : > { %1599 = vmatprep.subr.bf16.mxu0 %v2048_v0  ;;  %1619 = vmatprep.subr.bf16.mxu1 %v2048_v0 }
  0x83   : > { %754 = vperm.xlu1 %1781, %v707_v4  }
  0x85   : > { %1600 = vmatpush3.bf16.msra.mxu0 %v1789_v11  ;;  %1620 = vmatpush3.bf16.msra.mxu1 %v1797_v18  ;;  %v710_v11 = vld [vmem:[%s2722_s8 + $0x50] sm:$0xff] }
  0x86   : > { %1601 = vmatprep.subr.bf16.mxu0 %v2048_v0  ;;  %1621 = vmatprep.subr.bf16.mxu1 %v2048_v0 }
  0x87   : > { %764 = vperm.xlu1 %1781, %v709_v5  }
  0x89   : > { %1602 = vmatpush3.bf16.msra.mxu0 %v1790_v13  ;;  %1622 = vmatpush3.bf16.msra.mxu1 %v1798_v19 }
  0x8a   : > { %1627 = vmatprep.subr.bf16.mxu0 %v2048_v0 }
  0x8b   : > { %774 = vperm.xlu1 %1781, %v711_v6  }
  0x8c   : > { %1604 = vmatmul.mubr.bf16.vlgmr.msra.gmra.mrb[0].mxu0 %v2354_v17  ;;  %1624 = vmatmul.mubr.bf16.vlgmr.msra.gmra.mrb[0].mxu1 %v2354_v17 }
  0x8d   : > { %1643 = vmatprep.mubr.msk.bf16.mxu0 %vm2049_vm0, %v2048_v0 }
  0xf2   : > { %v720_v49 = vpop.permute.xlu1 %719 }
 0x15f   : > { %v482_v20 = vpop.f32.mrb[0].mxu0  ;;  %v587_v29 = vpop.f32.mrb[0].mxu1 }
 0x160   : > { %v1605_v21 = vpop.f32.mrb[1].mxu0  ;;  %v851_v23 = vmul.f32 %v482_v20, %v482_v20  ;;  %v860_v30 = vmul.f32 %v587_v29, %v587_v29  ;;  %v1625_v31 = vpop.f32.mrb[1].mxu1 }
 0x161   : > { %v485_v22 = vpop.f32.mrb[2].mxu0  ;;  %v590_v33 = vpop.f32.mrb[2].mxu1 }
 0x162   : > { %v852_v24 = vmul.f32 %v485_v22, %v485_v22  ;;  %v1606_v25 = vpop.f32.mrb[3].mxu0  ;;  %v861_v34 = vmul.f32 %v590_v33, %v590_v33  ;;  %v1626_v35 = vpop.f32.mrb[3].mxu1 }
 0x164   : > { %v853_v26 = vadd.f32 %v852_v24, %v851_v23  ;;  %v862_v37 = vadd.f32 %v861_v34, %v860_v30 }
 0x166   : > { %v854_v27 = vrot.slane %v853_v26, 4  ;;  %v863_v39 = vrot.slane %v862_v37, 4 }
 0x168   : > { %v855_v28 = vadd.f32 %v854_v27, %v853_v26  ;;  %v864_v41 = vadd.f32 %v863_v39, %v862_v37  ;;  %v1799_v39 = vld [vmem:[#allocation6] sm:$0xff]  }
 0x169   : > { %1628 = vmatpush3.bf16.msra.mxu0 %v1799_v39 }
 0x16a   : > { %v856_v32 = vrot.slane %v855_v28, 2  ;;  %v865_v43 = vrot.slane %v864_v41, 2  ;;  %1629 = vmatprep.subr.bf16.mxu0 %v2048_v0 }
 0x16c   : > { %v857_v36 = vadd.f32 %v856_v32, %v855_v28  ;;  %v866_v44 = vadd.f32 %v865_v43, %v864_v41  ;;  %v1800_v41 = vld [vmem:[#allocation6 + $0x8] sm:$0xff]   ;;  %v1802_v43 = vld [vmem:[#allocation6 + $0x18] sm:$0xff]  }
 0x16d   : > { %1630 = vmatpush3.bf16.msra.mxu0 %v1800_v41 }
 0x16e   : > { %v858_v38 = vrot.slane %v857_v36, 1  ;;  %v867_v45 = vrot.slane %v866_v44, 1  ;;  %1631 = vmatprep.subr.bf16.mxu0 %v2048_v0 }
 0x170   : > { %v859_v40 = vadd.f32 %v858_v38, %v857_v36  ;;  %v868_v46 = vadd.f32 %v867_v45, %v866_v44  ;;  %v713_v38 = vld [vmem:[%s2722_s8 + $0x68] sm:$0xff]  ;;  %v1803_v44 = vld [vmem:[#allocation6 + $0x20] sm:$0xff]  }
 0x171   : > { %v1804_v45 = vld [vmem:[#allocation6 + $0x28] sm:$0xff]  }
 0x172   : > { %v869_v42 = vmax.f32 %v859_v40, 1e-24  ;;  %v874_v47 = vmax.f32 %v868_v46, 1e-24  ;;  %v714_v40 = vld [vmem:[%s2722_s8 + $0x70] sm:$0xff] }
 0x173   : > { %v1805_v46 = vld [vmem:[#allocation6 + $0x30] sm:$0xff]  }
 0x174   : > { %1815 = vrsqrt.f32 %v869_v42  ;;  %v1801_v42 = vld [vmem:[#allocation6 + $0x10] sm:$0xff]  }
 0x175   : > { %1817 = vrsqrt.f32 %v874_v47  ;;  %1632 = vmatpush3.bf16.msra.mxu0 %v1801_v42  ;;  %v1806_v47 = vld [vmem:[#allocation6 + $0x38] sm:$0xff]  }
 0x176   : > { %1633 = vmatprep.subr.bf16.mxu0 %v2048_v0 }
 0x179   : > { %1634 = vmatpush3.bf16.msra.mxu0 %v1802_v43 }
 0x17a   : > { %1635 = vmatprep.subr.bf16.mxu0 %v2048_v0 }
 0x17d   : > { %1636 = vmatpush3.bf16.msra.mxu0 %v1803_v44 }
 0x17e   : > { %v1816_v48 = vpop.eup %1815  ;;  %1637 = vmatprep.subr.bf16.mxu0 %v2048_v0 }
 0x17f   : > { %v872_v50 = vmul.f32 %v1816_v48, %v485_v22  ;;  %v871_v51 = vmul.f32 %v1816_v48, %v482_v20  ;;  %v1818_v57 = vpop.eup %1817  ;;  %v715_v48 = vld [vmem:[%s2722_s8 + $0x78] sm:$0xff] }
 0x180   : > { %v876_v59 = vmul.f32 %v1818_v57, %v699_v54 }
 0x181   : > { %v873_v52 = vpack.c.bf16 %v872_v50, %v871_v51  ;;  %1638 = vmatpush3.bf16.msra.mxu0 %v1804_v45  ;;  %v725_v50 = vpop.permute.xlu1 %724 }
 0x182   : > { %v880_v61 = vrot.slane %v876_v59, %v879_v55  ;;  %1639 = vmatprep.subr.bf16.mxu0 %v2048_v0 }
 0x183   : > { %884 = vxpose.xlu0.c.b16.start.end [1/1] (short) %v873_v52, 128 }
 0x184   : > { %v881_v62 = vmul.f32 %v880_v61, %v587_v29  ;;  %v882_v63 = vmul.f32 %v880_v61, %v590_v33 }
 0x185   : > { %1640 = vmatpush3.bf16.msra.mxu0 %v1805_v46  ;;  %v735_v52 = vpop.permute.xlu1 %734 }
 0x186   : > { %v883_v2 = vpack.c.bf16 %v882_v63, %v881_v62  ;;  %1641 = vmatprep.subr.bf16.mxu0 %v2048_v0 }
 0x188   : > { %1647 = vmatprep.subr.bf16.mxu1 %v883_v2 }
 0x189   : > { %1648 = vmatpush3.bf16.msra.mxu1 %v883_v2  ;;  %1642 = vmatpush3.bf16.msra.mxu0 %v1806_v47  ;;  %v2492_v54 = vpop.permute.xlu1 %744 }
 0x18a   : > { %1665 = vmatprep.subr.bf16.mxu1 %v2048_v0  ;;  %1685 = vmatprep.subr.bf16.mxu0 %v2048_v0 }
 0x18c   : > { %1782 = vset.pattern.permute.xlu0 %v2050_v58  ;;  %1644 = vmatmul.mubr.bf16.vlgmr.msra.gmra.mrb[4].mxu0 %v2354_v17 }
 0x18d   : > { %1701 = vmatprep.mubr.msk.bf16.mxu0 %vm2049_vm0, %v2048_v0  ;;  %v2496_v55 = vpop.permute.xlu1 %754 }
 0x191   : > { %v2500_v57 = vpop.permute.xlu1 %764 }
 0x195   : > { %v2504_v59 = vpop.permute.xlu1 %774 }
 0x1a8   : > { %729 = vperm.xlu0 %1782, %v702_v7  }
 0x1ac   : > { %739 = vperm.xlu0 %1782, %v704_v8  }
 0x1b0   : > { %749 = vperm.xlu0 %1782, %v706_v9   ;;  %v2515_v9 = vld [vmem:[%s2721_s7] ss:$0 sm:$0xff] }
 0x1b1   : > { %vm803_vm2 = vcmp.eq.f32.partialorder %v720_v49, %v2515_v9  ;;  %vm804_vm4 = vcmp.eq.f32.partialorder %v725_v50, %v2515_v9  ;;  %vm806_vm5 = vcmp.eq.f32.partialorder %v735_v52, %v2515_v9  ;;  %vm808_vm7 = vcmp.eq.f32.partialorder %v2492_v54, %v2515_v9 }
 0x1b2   : > { %v1494_v41 = vsel %vm804_vm4, 1.0, %v2048_v0  ;;  %vm810_vm9 = vcmp.eq.f32.partialorder %v2496_v55, %v2515_v9  ;;  %vm812_vm14 = vcmp.eq.f32.partialorder %v2500_v57, %v2515_v9  ;;  %vm814_vm15 = vcmp.eq.f32.partialorder %v2504_v59, %v2515_v9 }
 0x1b4   : > { %759 = vperm.xlu0 %1782, %v708_v10  }
 0x1b8   : > { %769 = vperm.xlu0 %1782, %v710_v11  }
 0x1bc   : > { %779 = vperm.xlu0 %1782, %v712_v12  }
 0x1e9   : > { %v892_v13 = vpop.trf.xlu0 }
 0x1ea   : > { %1649 = vmatprep.mubr.msk.bf16.mxu1 %vm900_vm1, %v892_v13 }
 0x1ed   : > { %v893_v14 = vpop.trf.xlu0 }
 0x1ee   : > { %1650 = vmatmul.mubr.msk.bf16.vlgmr.msra.gmra.mrb[4].mxu1 %vm900_vm1, %v893_v14 }
 0x1f1   : > { %v894_v15 = vpop.trf.xlu0 }
 0x1f2   : > { %1653 = vmatprep.mubr.msk.bf16.mxu1 %vm900_vm1, %v894_v15  ;;  %v1493_v15 = vsel %vm803_vm2, 1.0, %v2048_v0 }
 0x1f5   : > { %v895_v16 = vpop.trf.xlu0 }
 0x1f6   : > { %1654 = vmatmul.mubr.msk.bf16.gmra.mrb[8].mxu1 %vm900_vm1, %v895_v16 }
 0x1f9   : > { %v896_v18 = vpop.trf.xlu0 }
 0x1fa   : > { %1657 = vmatprep.mubr.msk.bf16.mxu1 %vm900_vm1, %v896_v18 }
 0x1fd   : > { %v897_v19 = vpop.trf.xlu0 }
 0x1fe   : > { %1658 = vmatmul.mubr.msk.bf16.gmra.mrb[12].mxu1 %vm900_vm1, %v897_v19 }
 0x201   : > { %v898_v20 = vpop.trf.xlu0 }
 0x202   : > { %1661 = vmatprep.mubr.msk.bf16.mxu1 %vm900_vm1, %v898_v20 }
 0x205   : > { %v899_v21 = vpop.trf.xlu0 }
 0x206   : > { %1662 = vmatmul.mubr.msk.bf16.gmra.mrb[16].mxu1 %vm900_vm1, %v899_v21 }
 0x207   : > { %1681 = vmatprep.mubr.msk.bf16.mxu1 %vm2049_vm0, %v2048_v0 }
 0x227   : > { %v730_v51 = vpop.permute.xlu0 %729 }
 0x228   : > { %vm805_vm3 = vcmp.eq.f32.partialorder %v730_v51, %v2515_v9 }
 0x22b   : > { %v2490_v53 = vpop.permute.xlu0 %739 }
 0x22c   : > { %vm807_vm6 = vcmp.eq.f32.partialorder %v2490_v53, %v2515_v9 }
 0x22d   : > { %v1497_v52 = vsel %vm807_vm6, 1.0, %v2048_v0 }
 0x22f   : > { %v2494_v17 = vpop.permute.xlu0 %749 }
 0x230   : > { %vm809_vm8 = vcmp.eq.f32.partialorder %v2494_v17, %v2515_v9 }
 0x233   : > { %v2498_v56 = vpop.permute.xlu0 %759 }
 0x234   : > { %vm811_vm10 = vcmp.eq.f32.partialorder %v2498_v56, %v2515_v9 }
 0x237   : > { %v2502_v58 = vpop.permute.xlu0 %769 }
 0x238   : > { %vm813_vm11 = vcmp.eq.f32.partialorder %v2502_v58, %v2515_v9 }
 0x23b   : > { %v2506_v60 = vpop.permute.xlu0 %779 }
 0x23c   : > { %vm815_vm12 = vcmp.eq.f32.partialorder %v2506_v60, %v2515_v9 }
 0x23d   : > { %v1505_v58 = vsel %vm815_vm12, 1.0, %v2048_v0 }
 0x2c1   : > { %v2422_v22 = vpop.f32.mrb[4].mxu1 }
 0x2c2   : > { %1026 = vmax.xlane.f32.xlu1 %v2422_v22  ;;  %v2425_v23 = vpop.f32.mrb[5].mxu1 }
 0x2c3   : > { %1022 = vmax.xlane.f32.xlu0 %v2425_v23  ;;  %v2428_v24 = vpop.f32.mrb[6].mxu1 }
 0x2c4   : > { %v2430_v25 = vpop.f32.mrb[7].mxu1 }
 0x2c6   : > { %1028 = vmax.xlane.f32.xlu1 %v2428_v24 }
 0x2c9   : > { %v2433_v26 = vpop.f32.mrb[8].mxu1 }
 0x2ca   : > { %1024 = vmax.xlane.f32.xlu1 %v2430_v25  ;;  %v2436_v27 = vpop.f32.mrb[9].mxu1 }
 0x2cb   : > { %v2438_v28 = vpop.f32.mrb[10].mxu1 }
 0x2cc   : > { %1036 = vmax.xlane.f32.xlu0 %v2438_v28  ;;  %v2441_v29 = vpop.f32.mrb[11].mxu1 }
 0x2ce   : > { %1034 = vmax.xlane.f32.xlu1 %v2433_v26 }
 0x2d1   : > { %v2444_v30 = vpop.f32.mrb[12].mxu1 }
 0x2d2   : > { %1030 = vmax.xlane.f32.xlu1 %v2436_v27  ;;  %1042 = vmax.xlane.f32.xlu0 %v2444_v30  ;;  %v2448_v31 = vpop.f32.mrb[13].mxu1 }
 0x2d3   : > { %v2450_v32 = vpop.f32.mrb[14].mxu1 }
 0x2d4   : > { %v2452_v33 = vpop.f32.mrb[15].mxu1 }
 0x2d6   : > { %1032 = vmax.xlane.f32.xlu1 %v2441_v29  ;;  %1038 = vmax.xlane.f32.xlu0 %v2448_v31 }
 0x2d9   : > { %v2456_v34 = vpop.f32.mrb[16].mxu1 }
 0x2da   : > { %1050 = vmax.xlane.f32.xlu0 %v2456_v34  ;;  %v2459_v35 = vpop.f32.mrb[17].mxu1 }
 0x2db   : > { %v2461_v36 = vpop.f32.mrb[18].mxu1 }
 0x2dc   : > { %v2463_v37 = vpop.f32.mrb[19].mxu1 }
 0x2de   : > { %1046 = vmax.xlane.f32.xlu0 %v2459_v35 }
 0x2e7   : > { %784 = vperm.xlu1 %1781, %v713_v38  }
 0x2f4   : > { %789 = vperm.xlu0 %1782, %v714_v40  }
 0x30b   : > { %1044 = vmax.xlane.f32.xlu1 %v2450_v32 }
 0x30f   : > { %1040 = vmax.xlane.f32.xlu1 %v2452_v33 }
 0x313   : > { %1052 = vmax.xlane.f32.xlu1 %v2461_v36 }
 0x317   : > { %1048 = vmax.xlane.f32.xlu1 %v2463_v37 }
 0x328   : > { %794 = vperm.xlu1 %1781, %v715_v48  }
 0x34f   : > { %v1027_v61 = vpop.xlane.xlu1 %1026 }
 0x350   : > { %v1056_v62 = vsub.f32 %v2422_v22, %v1027_v61  ;;  %v1023_v63 = vpop.xlane.xlu0 %1022 }
 0x351   : > { %v1054_v1 = vsub.f32 %v2425_v23, %v1023_v63 }
 0x352   : > { %v1074_v2 = vmul.f32 1.442695, %v1056_v62 }
 0x353   : > { %v1070_v3 = vmul.f32 1.442695, %v1054_v1  ;;  %v1029_v4 = vpop.xlane.xlu1 %1028 }
 0x354   : > { %v1057_v5 = vsub.f32 %v2428_v24, %v1029_v4 }
 0x355   : > { %1819 = vpow2.f32 %v1070_v3 }
 0x356   : > { %1821 = vpow2.f32 %v1074_v2  ;;  %v1076_v6 = vmul.f32 1.442695, %v1057_v5  ;;  %v1499_v2 = vsel %vm809_vm8, 1.0, %v2048_v0  ;;  %v1500_v5 = vsel %vm810_vm9, 1.0, %v2048_v0 }
 0x357   : > { %v1025_v7 = vpop.xlane.xlu1 %1024 }
 0x358   : > { %v1055_v8 = vsub.f32 %v2430_v25, %v1025_v7  ;;  %1823 = vpow2.f32 %v1076_v6  ;;  %v1495_v25 = vsel %vm805_vm3, 1.0, %v2048_v0  ;;  %v1501_v6 = vsel %vm811_vm10, 1.0, %v2048_v0 }
 0x359   : > { %v1037_v11 = vpop.xlane.xlu0 %1036 }
 0x35a   : > { %v1072_v10 = vmul.f32 1.442695, %v1055_v8  ;;  %v1061_v22 = vsub.f32 %v2438_v28, %v1037_v11  ;;  %v1503_v8 = vsel %vm813_vm11, 1.0, %v2048_v0 }
 0x35b   : > { %v1035_v12 = vpop.xlane.xlu1 %1034 }
 0x35c   : > { %1825 = vpow2.f32 %v1072_v10  ;;  %v1060_v13 = vsub.f32 %v2433_v26, %v1035_v12  ;;  %v1084_v42 = vmul.f32 1.442695, %v1061_v22 }
 0x35e   : > { %v1082_v23 = vmul.f32 1.442695, %v1060_v13 }
 0x35f   : > { %v1820_v14 = vpop.eup %1819  ;;  %v1031_v16 = vpop.xlane.xlu1 %1030 }
 0x360   : > { %v1043_v18 = vpop.xlane.xlu0 %1042  ;;  %v1058_v19 = vsub.f32 %v2436_v27, %v1031_v16  ;;  %v2522_v20 = vmul.f32 %v1820_v14, %v1493_v15  ;;  %v1822_v21 = vpop.eup %1821 }
 0x361   : > { %v2531_v40 = vmul.f32 %v1822_v21, %v1495_v25  ;;  %v1064_v44 = vsub.f32 %v2444_v30, %v1043_v18 }
 0x362   : > { %v1078_v24 = vmul.f32 1.442695, %v1058_v19  ;;  %1118 = vadd.xlane.f32.xlu0 %v2522_v20  ;;  %v1824_v28 = vpop.eup %1823 }
 0x363   : > { %v1033_v26 = vpop.xlane.xlu1 %1032  ;;  %v1090_v49 = vmul.f32 1.442695, %v1064_v44 }
 0x364   : > { %v1039_v38 = vpop.xlane.xlu0 %1038  ;;  %1827 = vpow2.f32 %v1078_v24  ;;  %v1059_v27 = vsub.f32 %v2441_v29, %v1033_v26  ;;  %v1496_v29 = vsel %vm806_vm5, 1.0, %v2048_v0 }
 0x365   : > { %v1062_v39 = vsub.f32 %v2448_v31, %v1039_v38  ;;  %1829 = vpow2.f32 %v1082_v23  ;;  %v2541_v48 = vmul.f32 %v1824_v28, %v1496_v29 }
 0x366   : > { %v1826_v43 = vpop.eup %1825  ;;  %v1080_v45 = vmul.f32 1.442695, %v1059_v27  ;;  %1122 = vadd.xlane.f32.xlu0 %v2531_v40 }
 0x367   : > { %v1086_v46 = vmul.f32 1.442695, %v1062_v39  ;;  %v2539_v31 = vmul.f32 %v1826_v43, %v1494_v41  ;;  %v785_v60 = vpop.permute.xlu1 %784  ;;  %v1502_v41 = vsel %vm812_vm14, 1.0, %v2048_v0 }
 0x368   : > { %v1051_v47 = vpop.xlane.xlu0 %1050  ;;  %1831 = vpow2.f32 %v1080_v45  ;;  %vm816_vm0 = vcmp.eq.f32.partialorder %v785_v60, %v2515_v9 }
 0x369   : > { %1833 = vpow2.f32 %v1084_v42  ;;  %1120 = vadd.xlane.f32.xlu1 %v2539_v31  ;;  %v1068_v61 = vsub.f32 %v2456_v34, %v1051_v47  ;;  %v1506_v44 = vsel %vm816_vm0, 1.0, %v2048_v0  ;;  %v2620_v47 = vpop.f32.mrb[4].mxu0 }
 0x36a   : > { %1835 = vpow2.f32 %v1086_v46  ;;  %1124 = vadd.xlane.f32.xlu0 %v2541_v48 }
 0x36b   : > { %1837 = vpow2.f32 %v1090_v49  ;;  %v1098_v3 = vmul.f32 1.442695, %v1068_v61  ;;  %v1645_v49 = vpop.f32.mrb[5].mxu0 }
 0x36c   : > { %v1047_v30 = vpop.xlane.xlu0 %1046 }
 0x36d   : > { %v1066_v50 = vsub.f32 %v2459_v35, %v1047_v30  ;;  %v1498_v35 = vsel %vm808_vm7, 1.0, %v2048_v0  ;;  %v2622_v30 = vpop.f32.mrb[6].mxu0 }
 0x36e   : > { %v1828_v51 = vpop.eup %1827 }
 0x36f   : > { %v1094_v62 = vmul.f32 1.442695, %v1066_v50  ;;  %v2554_v63 = vmul.f32 %v1828_v51, %v1497_v52  ;;  %v1830_v1 = vpop.eup %1829  ;;  %v1182_v50 = vpack.c.bf16 %v2622_v30, %v2620_v47  ;;  %v1807_v51 = vld [vmem:[#allocation8] sm:$0xff]   ;;  %v1808_v52 = vld [vmem:[#allocation8 + $0x8] sm:$0xff]  }
 0x370   : > { %v2563_v54 = vmul.f32 %v1830_v1, %v1499_v2  ;;  %1686 = vmatpush3.bf16.msra.mxu0 %v1807_v51 }
 0x371   : > { %1126 = vadd.xlane.f32.xlu1 %v2554_v63  ;;  %1839 = vpow2.f32 %v1094_v62  ;;  %1687 = vmatprep.subr.bf16.mxu0 %v2048_v0  ;;  %v1809_v62 = vld [vmem:[#allocation8 + $0x10] sm:$0xff]  }
 0x372   : > { %v1832_v53 = vpop.eup %1831  ;;  %1841 = vpow2.f32 %v1098_v3  ;;  %v1811_v3 = vld [vmem:[#allocation8 + $0x20] sm:$0xff]  }
 0x373   : > { %v1834_v34 = vpop.eup %1833  ;;  %v2565_v17 = vmul.f32 %v1832_v53, %v1498_v35  ;;  %v790_v10 = vpop.permute.xlu0 %789  ;;  %v1810_v53 = vld [vmem:[#allocation8 + $0x18] sm:$0xff]  }
 0x374   : > { %v1836_v4 = vpop.eup %1835  ;;  %v2573_v55 = vmul.f32 %v1834_v34, %v1500_v5  ;;  %vm817_vm13 = vcmp.eq.f32.partialorder %v790_v10, %v2515_v9  ;;  %1688 = vmatpush3.bf16.msra.mxu0 %v1808_v52  ;;  %v1812_v34 = vld [vmem:[#allocation8 + $0x28] sm:$0xff]   ;;  %v1813_v5 = vld [vmem:[#allocation8 + $0x30] sm:$0xff]  }
 0x375   : > { %1130 = vadd.xlane.f32.xlu1 %v2563_v54  ;;  %1128 = vadd.xlane.f32.xlu0 %v2565_v17  ;;  %v2575_v56 = vmul.f32 %v1836_v4, %v1501_v6  ;;  %v1838_v7 = vpop.eup %1837  ;;  %v1507_v15 = vsel %vm817_vm13, 1.0, %v2048_v0 }
 0x376   : > { %v2582_v11 = vmul.f32 %v1838_v7, %v1503_v8  ;;  %1689 = vmatprep.subr.bf16.mxu0 %v2048_v0 }
 0x378   : > { %1690 = vmatpush3.bf16.msra.mxu0 %v1809_v62 }
 0x379   : > { %1132 = vadd.xlane.f32.xlu0 %v2573_v55  ;;  %1134 = vadd.xlane.f32.xlu1 %v2575_v56 }
 0x37a   : > { %1691 = vmatprep.subr.bf16.mxu0 %v2048_v0 }
 0x37b   : > { %v1840_v12 = vpop.eup %1839 }
 0x37c   : > { %v2587_v13 = vmul.f32 %v1840_v12, %v1505_v58  ;;  %v1842_v14 = vpop.eup %1841  ;;  %1692 = vmatpush3.bf16.msra.mxu0 %v1810_v53 }
 0x37d   : > { %1138 = vadd.xlane.f32.xlu1 %v2582_v11  ;;  %v2591_v16 = vmul.f32 %v1842_v14, %v1507_v15  ;;  %1693 = vmatprep.subr.bf16.mxu0 %v2048_v0 }
 0x380   : > { %1694 = vmatpush3.bf16.msra.mxu0 %v1811_v3 }
 0x381   : > { %1142 = vadd.xlane.f32.xlu1 %v2587_v13  ;;  %1695 = vmatprep.subr.bf16.mxu0 %v2048_v0 }
 0x384   : > { %1696 = vmatpush3.bf16.msra.mxu0 %v1812_v34 }
 0x385   : > { %1146 = vadd.xlane.f32.xlu1 %v2591_v16  ;;  %1697 = vmatprep.subr.bf16.mxu0 %v2048_v0 }
 0x388   : > { %1698 = vmatpush3.bf16.msra.mxu0 %v1813_v5 }
 0x389   : > { %1699 = vmatprep.subr.bf16.mxu0 %v2048_v0 }
 0x398   : > { %v1045_v18 = vpop.xlane.xlu1 %1044 }
 0x399   : > { %v1065_v19 = vsub.f32 %v2450_v32, %v1045_v18 }
 0x39b   : > { %v1092_v23 = vmul.f32 1.442695, %v1065_v19 }
 0x39c   : > { %v1041_v21 = vpop.xlane.xlu1 %1040 }
 0x39d   : > { %v1063_v22 = vsub.f32 %v2452_v33, %v1041_v21 }
 0x39f   : > { %v1088_v24 = vmul.f32 1.442695, %v1063_v22 }
 0x3a0   : > { %v1053_v25 = vpop.xlane.xlu1 %1052 }
 0x3a1   : > { %1843 = vpow2.f32 %v1088_v24  ;;  %v1069_v26 = vsub.f32 %v2461_v36, %v1053_v25  ;;  %v1504_v36 = vsel %vm814_vm15, 1.0, %v2048_v0 }
 0x3a2   : > { %1845 = vpow2.f32 %v1092_v23 }
 0x3a3   : > { %v1100_v39 = vmul.f32 1.442695, %v1069_v26 }
 0x3a4   : > { %v1049_v38 = vpop.xlane.xlu1 %1048 }
 0x3a5   : > { %v1067_v27 = vsub.f32 %v2463_v37, %v1049_v38 }
 0x3a7   : > { %v1096_v28 = vmul.f32 1.442695, %v1067_v27 }
 0x3a8   : > { %v795_v57 = vpop.permute.xlu1 %794 }
 0x3a9   : > { %1847 = vpow2.f32 %v1096_v28  ;;  %vm818_vm1 = vcmp.eq.f32.partialorder %v795_v57, %v2515_v9  ;;  %v1646_v9 = vpop.f32.mrb[7].mxu0 }
 0x3aa   : > { %1849 = vpow2.f32 %v1100_v39  ;;  %v1508_v46 = vsel %vm818_vm1, 1.0, %v2048_v0 }
 0x3ab   : > { %v1844_v32 = vpop.eup %1843 }
 0x3ac   : > { %v2603_v33 = vmul.f32 %v1844_v32, %v1502_v41  ;;  %v1846_v42 = vpop.eup %1845 }
 0x3ad   : > { %v2608_v37 = vmul.f32 %v1846_v42, %v1504_v36 }
 0x3ae   : > { %1136 = vadd.xlane.f32.xlu0 %v2603_v33 }
 0x3b2   : > { %1140 = vadd.xlane.f32.xlu0 %v2608_v37 }
 0x3b3   : > { %v1848_v43 = vpop.eup %1847 }
 0x3b4   : > { %v2613_v59 = vmul.f32 %v1848_v43, %v1506_v44  ;;  %v1850_v45 = vpop.eup %1849 }
 0x3b5   : > { %v2617_v29 = vmul.f32 %v1850_v45, %v1508_v46 }
 0x3b6   : > { %1144 = vadd.xlane.f32.xlu0 %v2613_v59 }
 0x3ba   : > { %1148 = vadd.xlane.f32.xlu0 %v2617_v29 }
 0x3ef   : > { %v1119_v61 = vpop.xlane.xlu0 %1118 }
 0x3f0   : > { %1851 = vrcp.f32 %v1119_v61 }
 0x3f3   : > { %v1123_v1 = vpop.xlane.xlu0 %1122 }
 0x3f6   : > { %v1121_v35 = vpop.xlane.xlu1 %1120 }
 0x3f7   : > { %1853 = vrcp.f32 %v1121_v35  ;;  %v1125_v2 = vpop.xlane.xlu0 %1124 }
 0x3f8   : > { %1855 = vrcp.f32 %v1125_v2 }
 0x3f9   : > { %1857 = vrcp.f32 %v1123_v1 }
 0x3fa   : > { %v1852_v4 = vpop.eup %1851 }
 0x3fb   : > { %v1166_v10 = vmul.f32 %v1852_v4, %v2522_v20 }
 0x3fe   : > { %v1127_v7 = vpop.xlane.xlu1 %1126 }
 0x401   : > { %v1854_v6 = vpop.eup %1853 }
 0x402   : > { %v1129_v8 = vpop.xlane.xlu0 %1128  ;;  %v1167_v12 = vmul.f32 %v1854_v6, %v2539_v31  ;;  %v1856_v14 = vpop.eup %1855 }
 0x403   : > { %1859 = vrcp.f32 %v1129_v8  ;;  %v1858_v15 = vpop.eup %1857  ;;  %v1169_v18 = vmul.f32 %v1856_v14, %v2541_v48  ;;  %v1131_v19 = vpop.xlane.xlu1 %1130 }
 0x404   : > { %v1183_v58 = vpack.c.bf16 %v1167_v12, %v1166_v10  ;;  %1861 = vrcp.f32 %v1127_v7  ;;  %v1168_v21 = vmul.f32 %v1858_v15, %v2531_v40 }
 0x406   : > { %1666 = vmatpush3.bf16.xpose.msra.mxu1 %v1183_v58  ;;  %v1133_v60 = vpop.xlane.xlu0 %1132  ;;  %v1184_v20 = vpack.c.bf16 %v1169_v18, %v1168_v21 }
 0x407   : > { %1667 = vmatprep.subr.bf16.mxu1 %v2048_v0  ;;  %1863 = vrcp.f32 %v1133_v60  ;;  %v1135_v39 = vpop.xlane.xlu1 %1134 }
 0x408   : > { %1865 = vrcp.f32 %v1131_v19 }
 0x409   : > { %1867 = vrcp.f32 %v1135_v39 }
 0x40d   : > { %v1860_v31 = vpop.eup %1859 }
 0x40e   : > { %1668 = vmatpush3.bf16.xpose.msra.mxu1 %v1184_v20  ;;  %v1862_v22 = vpop.eup %1861  ;;  %v1171_v23 = vmul.f32 %v1860_v31, %v2565_v17  ;;  %v1139_v17 = vpop.xlane.xlu1 %1138 }
 0x40f   : > { %1669 = vmatprep.subr.bf16.mxu1 %v2048_v0  ;;  %v1170_v24 = vmul.f32 %v1862_v22, %v2554_v63 }
 0x411   : > { %v1185_v25 = vpack.c.bf16 %v1171_v23, %v1170_v24  ;;  %v1864_v26 = vpop.eup %1863 }
 0x412   : > { %v1866_v38 = vpop.eup %1865  ;;  %v1173_v40 = vmul.f32 %v1864_v26, %v2573_v55  ;;  %v1143_v36 = vpop.xlane.xlu1 %1142 }
 0x413   : > { %v1172_v48 = vmul.f32 %v1866_v38, %v2563_v54  ;;  %v1868_v32 = vpop.eup %1867 }
 0x414   : > { %v1174_v55 = vmul.f32 %v1868_v32, %v2575_v56 }
 0x415   : > { %v1186_v27 = vpack.c.bf16 %v1173_v40, %v1172_v48 }
 0x416   : > { %1670 = vmatpush3.bf16.xpose.msra.mxu1 %v1185_v25  ;;  %v1147_v49 = vpop.xlane.xlu1 %1146 }
 0x417   : > { %1671 = vmatprep.subr.bf16.mxu1 %v2048_v0 }
 0x41e   : > { %1672 = vmatpush3.bf16.xpose.msra.mxu1 %v1186_v27 }
 0x41f   : > { %1673 = vmatprep.subr.bf16.mxu1 %v2048_v0 }
 0x43b   : > { %v1137_v28 = vpop.xlane.xlu0 %1136 }
 0x43c   : > { %1869 = vrcp.f32 %v1137_v28 }
 0x43f   : > { %v1141_v63 = vpop.xlane.xlu0 %1140 }
 0x440   : > { %1871 = vrcp.f32 %v1141_v63 }
 0x441   : > { %1873 = vrcp.f32 %v1139_v17 }
 0x443   : > { %v1145_v41 = vpop.xlane.xlu0 %1144 }
 0x444   : > { %1875 = vrcp.f32 %v1145_v41 }
 0x445   : > { %1877 = vrcp.f32 %v1143_v36 }
 0x446   : > { %v1870_v42 = vpop.eup %1869 }
 0x447   : > { %v1175_v54 = vmul.f32 %v1870_v42, %v2603_v33  ;;  %v1149_v45 = vpop.xlane.xlu0 %1148 }
 0x448   : > { %1879 = vrcp.f32 %v1149_v45 }
 0x449   : > { %v1187_v57 = vpack.c.bf16 %v1175_v54, %v1174_v55  ;;  %1881 = vrcp.f32 %v1147_v49 }
 0x44a   : > { %v1872_v43 = vpop.eup %1871 }
 0x44b   : > { %1674 = vmatpush3.bf16.xpose.msra.mxu1 %v1187_v57  ;;  %v1874_v44 = vpop.eup %1873  ;;  %v1177_v46 = vmul.f32 %v1872_v43, %v2608_v37 }
 0x44c   : > { %1675 = vmatprep.subr.bf16.mxu1 %v2048_v0  ;;  %v1176_v9 = vmul.f32 %v1874_v44, %v2582_v11 }
 0x44e   : > { %v1188_v51 = vpack.c.bf16 %v1177_v46, %v1176_v9  ;;  %v1876_v52 = vpop.eup %1875 }
 0x44f   : > { %v1878_v56 = vpop.eup %1877  ;;  %v1179_v33 = vmul.f32 %v1876_v52, %v2613_v59  ;;  %v1814_v59 = vld [vmem:[#allocation8 + $0x38] sm:$0xff]  }
 0x450   : > { %v1178_v61 = vmul.f32 %v1878_v56, %v2587_v13  ;;  %1700 = vmatpush3.bf16.msra.mxu0 %v1814_v59 }
 0x452   : > { %v1189_v62 = vpack.c.bf16 %v1179_v33, %v1178_v61  ;;  %v1880_v1 = vpop.eup %1879 }
 0x453   : > { %1676 = vmatpush3.bf16.xpose.msra.mxu1 %v1188_v51  ;;  %v1882_v53 = vpop.eup %1881  ;;  %v1181_v11 = vmul.f32 %v1880_v1, %v2617_v29 }
 0x454   : > { %1677 = vmatprep.subr.bf16.mxu1 %v2048_v0  ;;  %v1180_v37 = vmul.f32 %v1882_v53, %v2591_v16 }
 0x456   : > { %v1190_v35 = vpack.c.bf16 %v1181_v11, %v1180_v37 }
 0x45b   : > { %1678 = vmatpush3.bf16.xpose.msra.mxu1 %v1189_v62 }
 0x45c   : > { %1679 = vmatprep.subr.bf16.mxu1 %v2048_v0  ;;  %v1517_v0 = vld [vmem:[%s2719_s5] ss:$0 sm:$0xff] }
 0x463   : > { %1680 = vmatpush3.bf16.xpose.msra.mxu1 %v1190_v35 }
 0x46a   : > { %1682 = vmatmul.mubr.bf16.vlgmr.msra.gmra.mrb[20].mxu1 %v1182_v50 }
 0x53d   : > { %v1225_v13 = vpop.f32.mrb[20].mxu1 }
 0x53e   : > { %v1683_v2 = vpop.f32.mrb[21].mxu1 }
 0x53f   : > { %v1228_v3 = vpop.f32.mrb[22].mxu1 }
 0x540   : > { %v1232_v34 = vpack.c.bf16 %v1228_v3, %v1225_v13  ;;  %v1684_v4 = vpop.f32.mrb[23].mxu1 }
 0x542   : > { %1702 = vmatmul.mubr.bf16.vlgmr.msra.gmra.mrb[8].mxu0 %v1232_v34 }
 0x615   : > { %v1340_v16 = vpop.f32.mrb[8].mxu0 }
 0x616   : > { %v1341_v29 = vadd.f32 %v1517_v0, %v1340_v16  ;;  %v1703_v47 = vpop.f32.mrb[9].mxu0 }
 0x617   : > { %v1343_v30 = vpop.f32.mrb[10].mxu0 }
 0x618   : > { %1347 = vst [vmem:[%s379_s21] sm:$0xff] %v1341_v29  ;;  %v1344_v50 = vadd.f32 %v1517_v0, %v1343_v30  ;;  %v1704_v5 = vpop.f32.mrb[11].mxu0 }
 0x61a   : > { %1348 = vst [vmem:[%s379_s21 + $0x8] sm:$0xff] %v1344_v50 }
 0x61b   : > { %1982 = shalt.err (!%p1979_p2)
}
 0x61c   : > { %s1983_s23 = scalar_lea.hbm %s2670_s15, 256  ;;  %s1987_s18 = scalar_lea.hbm %s2723_s9, 512 }
 0x61d   : > { %p1984_p13 = scmp.ne.s32.totalorder %s2670_s15, %s1983_s23  ;;  %p1988_p4 = scmp.lt.u32.totalorder %s2670_s15, %s2723_s9 }
 0x61e   : > { %p1989_p5 = scmp.lt.u32.totalorder %s1987_s18, %s1983_s23  ;;  %p1991_p11 = scmp.lt.u32.totalorder %s1983_s23, %s2670_s15 }
 0x61f   : > { %p1985_p6 = pnand %p1984_p13, %p2739_p0 }
 0x620   : > { %p1990_p8 = por %p1989_p5, %p1988_p4 }
 0x621   : > { %p1986_p10 = pneg %p1985_p6 }
 0x622   : > { %p1992_p1 = por %p1991_p11, %p1990_p8 }
 0x624   : > { %p1993_p3 = pnand %p1992_p1, %p1986_p10 }
 0x626   : > { %1996 = shalt.err (!%p1993_p3)
}
 0x627   : > { %s2052_s13 = smov 128   ;;  %s2053_s17 = smov 8  }
 0x628   : > { %1715 = dma.vmem_to_hbm [thread:$0]  (%p2739_p0), %s2665_s25, 256, %s2670_s15, %s1350_s28, %s2052_s13, %s2052_s13, %s2053_s17  }
 0x629 PF: > { %s2740_s14 = sld [smem:[#allocation13_spill]]  ;;  %s1378_s16 = sand.u32 1, %s2027_s30  }
 0x62a   : > { %p2742_p9 = scmp.ge.s32.totalorder %s2039_s12, 2  ;;  %s1379_s23 = scalar_lea.sflag [#allocation5], %s1378_s16 }
 0x62f   : > { %p2741_p7 = scmp.ne.s32.totalorder %s2740_s14, 0 }
 0x631   : > { %p1729_p12 = pnand %p2742_p9, %p2741_p7 }
 0x633   : > { %2022 = dma.done.wait (!%p1729_p12), %s1379_s23, 256  }
 0x634   : > { %2024 = vsyncadd (!%p1729_p12), %s1379_s23, 4294967040  ;;  %p23_p2 = scmp.ge.s32.totalorder %s2214_s24, 4   ;;  %s2743_s30 = smov %s2031_s10 }
 0x635   : > { %s2744_s10 = smov %s2035_s11  ;;  %s2745_s11 = smov %s2230_s27 }
 0x636   : > { %s2746_s12 = smov %s2214_s24  ;;  %25 = sbr.rel (!%p23_p2) target bundleno = 6 (0x6), region = 109 }
 0x63d   :  { %1384 = vsyncpa [#allocation4], 1 }
 0x63e   :  { %1386 = vsyncpa [#allocation4 + $0x1], 1 }
 0x63f   :  { %1387 = vsyncpa [#allocation7], 1 }
 0x640   :  { %1388 = vsyncpa [#allocation5], 1 }
 0x641   :  { %1390 = vsyncpa [#allocation5 + $0x1], 1 }

</bundles_post_ra>
